<compile_context>
chip_gen: v7x
topology: tpu7x:2x2x1
jax: 0.10.0
libtpu: 0.0.40
codegen_flags: <defaults>
</compile_context>

<pallas_src>
import math

import jax
import jax.numpy as jnp
import numpy as np
from jax import lax
from jax.experimental import pallas as pl
from jax.experimental.pallas import tpu as pltpu

_INV_SQRT2 = 1.0 / math.sqrt(2.0)
_LN_EPS = 1e-5          # torch.nn.LayerNorm default
_LANE = 128


def _layernorm(h, gamma, beta):
    mean = jnp.mean(h, axis=-1, keepdims=True)
    var = jnp.mean(jnp.square(h - mean), axis=-1, keepdims=True)
    return (h - mean) * lax.rsqrt(var + _LN_EPS) * gamma + beta


def _gelu_exact(h):
    # torch.nn.GELU default = exact (erf-based) GELU.
    return 0.5 * h * (1.0 + lax.erf(h * _INV_SQRT2))


def _build_kernel(C, n_w, vec_offsets):
    """C: channel width; n_w: number of Linear weights; vec_offsets: packed 1-D params."""

    def kernel(x_ref, vec_ref, *refs):
        w_refs = refs[:n_w]          # bf16 weight matrices, fully VMEM-resident
        out_ref = refs[n_w]          # (3*tb, C) f32

        def vslice(idx):             # (1, d) f32 view of the packed-vector input
            off, d = vec_offsets[idx]
            return vec_ref[:, off:off + d]

        # --- up_sample: Linear(C -> 3C), bf16 x bf16 -> f32 accumulate ---
        y = jnp.dot(x_ref[...], w_refs[0][...],
                    preferred_element_type=jnp.float32) + vslice(0)
        # Chunk-major row stack of the three lane-aligned C-wide chunks (in registers; the
        # row permutation vs. torch's reshape commutes with the row-wise pipeline below).
        h = jnp.concatenate([y[:, k * C:(k + 1) * C] for k in range(3)], axis=0)

        # --- 4 encoder + 4 decoder blocks: LayerNorm -> GELU -> Linear (static unroll) ---
        for blk in range(1, n_w):
            gamma = vslice(1 + 3 * (blk - 1))
            beta = vslice(2 + 3 * (blk - 1))
            bias = vslice(3 + 3 * (blk - 1))
            h = _layernorm(h, gamma, beta)                                # f32 VPU math
            h = _gelu_exact(h)
            h = jnp.dot(h.astype(jnp.bfloat16), w_refs[blk][...],
                        preferred_element_type=jnp.float32) + bias

        out_ref[...] = h             # (3*tb, C): [pst rows | prst rows | ftr rows]

    return kernel


def _pack_vectors(vecs, align=_LANE):
    """Pack (1, d) vectors into one (1, total) f32 array; each segment lane-aligned."""
    parts, offsets, off = [], [], 0
    for v in vecs:
        v = jnp.asarray(v, jnp.float32).reshape(1, -1)
        d = int(v.shape[1])
        pad = (-d) % align
        if pad:
            v = jnp.pad(v, ((0, 0), (0, pad)))
        offsets.append((off, d))
        parts.append(v)
        off += d + pad
    return jnp.concatenate(parts, axis=1), offsets


def autoencoder_forward(x, params, *, row_tile=None):
    B, C = map(int, x.shape)
    blocks = params["encoder"] + params["decoder"]

    # Weight matrices: bf16 inputs, VMEM-resident for the whole kernel (~0.42 MiB total).
    w_list = [params["up_w"]] + [blk["w"] for blk in blocks]
    w_bf16 = [jnp.asarray(w, jnp.bfloat16) for w in w_list]
    w_shapes = [tuple(map(int, w.shape)) for w in w_bf16]
    n_w = len(w_bf16)

    # All 1-D parameters packed into a single f32 input (one DMA instead of 18).
    vecs = [params["up_b"]]
    for blk in blocks:
        vecs += [blk["ln_w"], blk["ln_b"], blk["b"]]
    vec_packed, vec_offsets = _pack_vectors(vecs)

    # Row tile: keep the MXU M-dim large but VMEM bounded; degenerates to grid=(1,) at B=8.
    # (For big batches: 256-row tiles for v6e/v7x's 256-wide MXU; 128 is enough on v5e.)
    if row_tile is None:
        row_tile = B
        for cand in (512, 256, 128):
            if B % cand == 0:
                row_tile = cand
                break
    assert B % row_tile == 0, "row_tile must divide the batch"
    n_tiles = B // row_tile

    kernel = _build_kernel(C, n_w, vec_offsets)

    in_specs = (
        [pl.BlockSpec((row_tile, C), lambda i: (i, 0))]                       # x tile
        + [pl.BlockSpec(tuple(map(int, vec_packed.shape)), lambda i: (0, 0))]  # packed vecs
        + [pl.BlockSpec(s, lambda i: (0, 0)) for s in w_shapes]                # weights
    )
    out_specs = pl.BlockSpec((3 * row_tile, C), lambda i: (i, 0))

    # Advisory cost model: 2*M*K*N per matmul, one erf per LN/GELU input element.
    mm_dims = [(row_tile * n_tiles, w_shapes[0][0], w_shapes[0][1])] + [
        (3 * B, k, n) for (k, n) in w_shapes[1:]]
    flops = sum(2 * m * k * n for m, k, n in mm_dims)
    transcendentals = sum(3 * B * k for (k, _) in w_shapes[1:])
    bytes_accessed = (B * C * 2 + sum(k * n * 2 for (k, n) in w_shapes)
                      + int(vec_packed.size) * 4 + 3 * B * C * 4)

    out = pl.pallas_call(
        kernel,
        out_shape=jax.ShapeDtypeStruct((3 * B, C), jnp.float32),
        grid=(n_tiles,),
        in_specs=in_specs,
        out_specs=out_specs,
        compiler_params=pltpu.CompilerParams(
            dimension_semantics=("parallel",),          # shard row tiles across v7x TCs
            vmem_limit_bytes=32 << 20,                  # sized for v7x's scoped default
        ),
        cost_estimate=pl.CostEstimate(flops=flops,
                                      transcendentals=transcendentals,
                                      bytes_accessed=bytes_accessed),
    )(x.astype(jnp.bfloat16), vec_packed, *w_bf16)

    # Undo per-tile chunk-major stacking -> (hat_pst, hat_prst, hat_ftr), each (B, C).
    out = out.reshape(n_tiles, 3, row_tile, C).transpose(1, 0, 2, 3).reshape(3, B, C)
    return out[0], out[1], out[2]


def init_params(key, in_channel, ch_mult=(0.5, 2, 2, 2)):
    """Deterministic init mirroring torch defaults (uniform(-1/sqrt(fan_in), ...))."""

    def linear(k, fan_in, fan_out):
        kw, kb = jax.random.split(k)
        bound = 1.0 / math.sqrt(fan_in)
        w = jax.random.uniform(kw, (fan_in, fan_out), jnp.float32, -bound, bound)
        b = jax.random.uniform(kb, (1, fan_out), jnp.float32, -bound, bound)
        return w, b

    keys = jax.random.split(key, 1 + 2 * len(ch_mult))
    params = {}
    c = in_channel
    params["up_w"], params["up_b"] = linear(keys[0], c, 3 * c)

    enc = []
    for lvl, mult in enumerate(ch_mult):
        out_c = int(c // mult)
        w, b = linear(keys[1 + lvl], c, out_c)
        enc.append(dict(ln_w=jnp.ones((1, c), jnp.float32),
                        ln_b=jnp.zeros((1, c), jnp.float32), w=w, b=b))
        c = out_c

    dec = []
    for lvl, mult in enumerate(ch_mult[::-1]):
        out_c = int(c * mult)
        w, b = linear(keys[1 + len(ch_mult) + lvl], c, out_c)
        dec.append(dict(ln_w=jnp.ones((1, c), jnp.float32),
                        ln_b=jnp.zeros((1, c), jnp.float32), w=w, b=b))
        c = out_c

    params["encoder"] = enc
    params["decoder"] = dec
    return params


def reference_forward(x, params, matmul_dtype=jnp.float32):
    """Pure-JAX reference reproducing the PyTorch forward.

    matmul_dtype=float32  -> exact module semantics.
    matmul_dtype=bfloat16 -> same precision policy as the kernel (bf16 operands, f32 acc).
    """
    B, C = x.shape

    def mm(a, w):
        return jnp.dot(a.astype(matmul_dtype), w.astype(matmul_dtype),
                       preferred_element_type=jnp.float32)

    h = (mm(x, params["up_w"]) + params["up_b"]).reshape(3 * B, C)
    for blk in params["encoder"] + params["decoder"]:
        mean = h.mean(-1, keepdims=True)
        var = ((h - mean) ** 2).mean(-1, keepdims=True)
        h = (h - mean) / jnp.sqrt(var + _LN_EPS) * blk["ln_w"] + blk["ln_b"]
        h = jax.nn.gelu(h, approximate=False)
        h = mm(h, blk["w"]) + blk["b"]
    out = h.reshape(B, 3, C).transpose(1, 0, 2)   # (3, B, C)
    return out[0], out[1], out[2]


if __name__ == "__main__":
    key = jax.random.PRNGKey(0)
    kx, kp = jax.random.split(key)

    B, C = 8, 128                     # in_channel must be divisible by 4 (C//2//2)
    x = jax.random.normal(kx, (B, C), dtype=jnp.float32)
    params = init_params(kp, C)

    hat = autoencoder_forward(x, params)
    jax.block_until_ready(hat)

    # Tight check vs. a reference using the kernel's own precision policy (bf16 matmul
    # operands, f32 accumulation): differences are only accumulation-order / ulp level.
    ref_bf16 = reference_forward(x, params, matmul_dtype=jnp.bfloat16)
    for got, want in zip(hat, ref_bf16):
        np.testing.assert_allclose(np.asarray(got), np.asarray(want), rtol=5e-3, atol=5e-3)

    # Loose check vs. the exact all-f32 module semantics (bounds the deliberate bf16 drift).
    ref_f32 = reference_forward(x, params, matmul_dtype=jnp.float32)
    for got, want in zip(hat, ref_f32):
        np.testing.assert_allclose(np.asarray(got), np.asarray(want), rtol=6e-2, atol=6e-2)

    assert all(o.shape == (B, C) for o in hat)
    print("KERNEL_OK")
</pallas_src>

<mosaic_0001>
module attributes {stable_mosaic.version = 11 : i64} {
  func.func @kernel(%arg0: i32, %arg1: memref<8x128xbf16, #tpu.memory_space<vmem>>, %arg2: memref<1x4224xf32, #tpu.memory_space<vmem>>, %arg3: memref<128x384xbf16, #tpu.memory_space<vmem>>, %arg4: memref<128x256xbf16, #tpu.memory_space<vmem>>, %arg5: memref<256x128xbf16, #tpu.memory_space<vmem>>, %arg6: memref<128x64xbf16, #tpu.memory_space<vmem>>, %arg7: memref<64x32xbf16, #tpu.memory_space<vmem>>, %arg8: memref<32x64xbf16, #tpu.memory_space<vmem>>, %arg9: memref<64x128xbf16, #tpu.memory_space<vmem>>, %arg10: memref<128x256xbf16, #tpu.memory_space<vmem>>, %arg11: memref<256x128xbf16, #tpu.memory_space<vmem>>, %arg12: memref<24x128xf32, #tpu.memory_space<vmem>>) attributes {dimension_semantics = [#tpu.dimension_semantics<parallel>], iteration_bounds = array<i64: 1>, scalar_prefetch = 0 : i64, scratch_operands = 0 : i64, tpu.core_type = #tpu.core_type<tc>, window_params = [{transform_indices = @transform_0, window_bounds = array<i64: 8, 128>}, {pipeline_mode = #tpu.pipeline_mode<synchronous>, transform_indices = @transform_1, window_bounds = array<i64: 1, 4224>}, {pipeline_mode = #tpu.pipeline_mode<synchronous>, transform_indices = @transform_2, window_bounds = array<i64: 128, 384>}, {pipeline_mode = #tpu.pipeline_mode<synchronous>, transform_indices = @transform_3, window_bounds = array<i64: 128, 256>}, {pipeline_mode = #tpu.pipeline_mode<synchronous>, transform_indices = @transform_4, window_bounds = array<i64: 256, 128>}, {pipeline_mode = #tpu.pipeline_mode<synchronous>, transform_indices = @transform_5, window_bounds = array<i64: 128, 64>}, {pipeline_mode = #tpu.pipeline_mode<synchronous>, transform_indices = @transform_6, window_bounds = array<i64: 64, 32>}, {pipeline_mode = #tpu.pipeline_mode<synchronous>, transform_indices = @transform_7, window_bounds = array<i64: 32, 64>}, {pipeline_mode = #tpu.pipeline_mode<synchronous>, transform_indices = @transform_8, window_bounds = array<i64: 64, 128>}, {pipeline_mode = #tpu.pipeline_mode<synchronous>, transform_indices = @transform_9, window_bounds = array<i64: 128, 256>}, {pipeline_mode = #tpu.pipeline_mode<synchronous>, transform_indices = @transform_10, window_bounds = array<i64: 256, 128>}, {transform_indices = @transform_11, window_bounds = array<i64: 24, 128>}]} {
    %c0 = arith.constant 0 : index
    %c0_0 = arith.constant 0 : index
    %0 = vector.load %arg1[%c0, %c0_0] : memref<8x128xbf16, #tpu.memory_space<vmem>>, vector<8x128xbf16>
    %c0_1 = arith.constant 0 : index
    %c0_2 = arith.constant 0 : index
    %1 = vector.load %arg3[%c0_1, %c0_2] : memref<128x384xbf16, #tpu.memory_space<vmem>>, vector<128x384xbf16>
    %cst = arith.constant dense<0.000000e+00> : vector<8x384xf32>
    %2 = tpu.matmul %0, %1, %cst {dimension_numbers = #tpu.dot_dimension_numbers<[1], [0], [0], [1], [0, 0, 1, 1], [], []>} : vector<8x128xbf16>, vector<128x384xbf16>, vector<8x384xf32> -> vector<8x384xf32>
    %c0_3 = arith.constant 0 : index
    %c0_4 = arith.constant 0 : index
    %3 = vector.load %arg2[%c0_3, %c0_4] : memref<1x4224xf32, #tpu.memory_space<vmem>>, vector<1x384xf32>
    %4 = vector.broadcast %3 : vector<1x384xf32> to vector<8x384xf32>
    %5 = arith.addf %2, %4 : vector<8x384xf32>
    %6 = vector.extract_strided_slice %5 {offsets = [0, 0], sizes = [8, 128], strides = [1, 1]} : vector<8x384xf32> to vector<8x128xf32>
    %7 = vector.extract_strided_slice %5 {offsets = [0, 128], sizes = [8, 128], strides = [1, 1]} : vector<8x384xf32> to vector<8x128xf32>
    %8 = vector.extract_strided_slice %5 {offsets = [0, 256], sizes = [8, 128], strides = [1, 1]} : vector<8x384xf32> to vector<8x128xf32>
    %9 = tpu.concatenate %6, %7, %8 in 0 : vector<8x128xf32>, vector<8x128xf32>, vector<8x128xf32> -> vector<24x128xf32>
    %c0_5 = arith.constant 0 : index
    %c384 = arith.constant 384 : index
    %10 = vector.load %arg2[%c0_5, %c384] : memref<1x4224xf32, #tpu.memory_space<vmem>>, vector<1x128xf32>
    %c0_6 = arith.constant 0 : index
    %c512 = arith.constant 512 : index
    %11 = vector.load %arg2[%c0_6, %c512] : memref<1x4224xf32, #tpu.memory_space<vmem>>, vector<1x128xf32>
    %c0_7 = arith.constant 0 : index
    %c640 = arith.constant 640 : index
    %12 = vector.load %arg2[%c0_7, %c640] : memref<1x4224xf32, #tpu.memory_space<vmem>>, vector<1x256xf32>
    %cst_8 = arith.constant dense<0.000000e+00> : vector<24xf32>
    %13 = vector.multi_reduction <add>, %9, %cst_8 [1] : vector<24x128xf32> to vector<24xf32>
    %14 = vector.shape_cast %13 : vector<24xf32> to vector<24x1xf32>
    %cst_9 = arith.constant 1.280000e+02 : f32
    %15 = vector.broadcast %cst_9 : f32 to vector<24x1xf32>
    %16 = arith.divf %14, %15 : vector<24x1xf32>
    %17 = vector.broadcast %16 : vector<24x1xf32> to vector<24x128xf32>
    %18 = arith.subf %9, %17 : vector<24x128xf32>
    %19 = arith.mulf %18, %18 : vector<24x128xf32>
    %cst_10 = arith.constant dense<0.000000e+00> : vector<24xf32>
    %20 = vector.multi_reduction <add>, %19, %cst_10 [1] : vector<24x128xf32> to vector<24xf32>
    %21 = vector.shape_cast %20 : vector<24xf32> to vector<24x1xf32>
    %cst_11 = arith.constant 1.280000e+02 : f32
    %22 = vector.broadcast %cst_11 : f32 to vector<24x1xf32>
    %23 = arith.divf %21, %22 : vector<24x1xf32>
    %24 = vector.broadcast %16 : vector<24x1xf32> to vector<24x128xf32>
    %25 = arith.subf %9, %24 : vector<24x128xf32>
    %cst_12 = arith.constant 9.99999974E-6 : f32
    %26 = vector.broadcast %cst_12 : f32 to vector<24x1xf32>
    %27 = arith.addf %23, %26 : vector<24x1xf32>
    %28 = math.rsqrt %27 : vector<24x1xf32>
    %29 = vector.broadcast %28 : vector<24x1xf32> to vector<24x128xf32>
    %30 = arith.mulf %25, %29 : vector<24x128xf32>
    %31 = vector.broadcast %10 : vector<1x128xf32> to vector<24x128xf32>
    %32 = arith.mulf %30, %31 : vector<24x128xf32>
    %33 = vector.broadcast %11 : vector<1x128xf32> to vector<24x128xf32>
    %34 = arith.addf %32, %33 : vector<24x128xf32>
    %cst_13 = arith.constant 5.000000e-01 : f32
    %35 = vector.broadcast %cst_13 : f32 to vector<24x128xf32>
    %36 = arith.mulf %35, %34 : vector<24x128xf32>
    %cst_14 = arith.constant 0.707106769 : f32
    %37 = vector.broadcast %cst_14 : f32 to vector<24x128xf32>
    %38 = arith.mulf %34, %37 : vector<24x128xf32>
    %39 = math.erf %38 : vector<24x128xf32>
    %cst_15 = arith.constant 1.000000e+00 : f32
    %40 = vector.broadcast %cst_15 : f32 to vector<24x128xf32>
    %41 = arith.addf %40, %39 : vector<24x128xf32>
    %42 = arith.mulf %36, %41 : vector<24x128xf32>
    %43 = arith.truncf %42 : vector<24x128xf32> to vector<24x128xbf16>
    %c0_16 = arith.constant 0 : index
    %c0_17 = arith.constant 0 : index
    %44 = vector.load %arg4[%c0_16, %c0_17] : memref<128x256xbf16, #tpu.memory_space<vmem>>, vector<128x256xbf16>
    %cst_18 = arith.constant dense<0.000000e+00> : vector<24x256xf32>
    %45 = tpu.matmul %43, %44, %cst_18 {dimension_numbers = #tpu.dot_dimension_numbers<[1], [0], [0], [1], [0, 0, 1, 1], [], []>} : vector<24x128xbf16>, vector<128x256xbf16>, vector<24x256xf32> -> vector<24x256xf32>
    %46 = vector.broadcast %12 : vector<1x256xf32> to vector<24x256xf32>
    %47 = arith.addf %45, %46 : vector<24x256xf32>
    %c0_19 = arith.constant 0 : index
    %c896 = arith.constant 896 : index
    %48 = vector.load %arg2[%c0_19, %c896] : memref<1x4224xf32, #tpu.memory_space<vmem>>, vector<1x256xf32>
    %c0_20 = arith.constant 0 : index
    %c1152 = arith.constant 1152 : index
    %49 = vector.load %arg2[%c0_20, %c1152] : memref<1x4224xf32, #tpu.memory_space<vmem>>, vector<1x256xf32>
    %c0_21 = arith.constant 0 : index
    %c1408 = arith.constant 1408 : index
    %50 = vector.load %arg2[%c0_21, %c1408] : memref<1x4224xf32, #tpu.memory_space<vmem>>, vector<1x128xf32>
    %cst_22 = arith.constant dense<0.000000e+00> : vector<24xf32>
    %51 = vector.multi_reduction <add>, %47, %cst_22 [1] : vector<24x256xf32> to vector<24xf32>
    %52 = vector.shape_cast %51 : vector<24xf32> to vector<24x1xf32>
    %cst_23 = arith.constant 2.560000e+02 : f32
    %53 = vector.broadcast %cst_23 : f32 to vector<24x1xf32>
    %54 = arith.divf %52, %53 : vector<24x1xf32>
    %55 = vector.broadcast %54 : vector<24x1xf32> to vector<24x256xf32>
    %56 = arith.subf %47, %55 : vector<24x256xf32>
    %57 = arith.mulf %56, %56 : vector<24x256xf32>
    %cst_24 = arith.constant dense<0.000000e+00> : vector<24xf32>
    %58 = vector.multi_reduction <add>, %57, %cst_24 [1] : vector<24x256xf32> to vector<24xf32>
    %59 = vector.shape_cast %58 : vector<24xf32> to vector<24x1xf32>
    %cst_25 = arith.constant 2.560000e+02 : f32
    %60 = vector.broadcast %cst_25 : f32 to vector<24x1xf32>
    %61 = arith.divf %59, %60 : vector<24x1xf32>
    %62 = vector.broadcast %54 : vector<24x1xf32> to vector<24x256xf32>
    %63 = arith.subf %47, %62 : vector<24x256xf32>
    %cst_26 = arith.constant 9.99999974E-6 : f32
    %64 = vector.broadcast %cst_26 : f32 to vector<24x1xf32>
    %65 = arith.addf %61, %64 : vector<24x1xf32>
    %66 = math.rsqrt %65 : vector<24x1xf32>
    %67 = vector.broadcast %66 : vector<24x1xf32> to vector<24x256xf32>
    %68 = arith.mulf %63, %67 : vector<24x256xf32>
    %69 = vector.broadcast %48 : vector<1x256xf32> to vector<24x256xf32>
    %70 = arith.mulf %68, %69 : vector<24x256xf32>
    %71 = vector.broadcast %49 : vector<1x256xf32> to vector<24x256xf32>
    %72 = arith.addf %70, %71 : vector<24x256xf32>
    %cst_27 = arith.constant 5.000000e-01 : f32
    %73 = vector.broadcast %cst_27 : f32 to vector<24x256xf32>
    %74 = arith.mulf %73, %72 : vector<24x256xf32>
    %cst_28 = arith.constant 0.707106769 : f32
    %75 = vector.broadcast %cst_28 : f32 to vector<24x256xf32>
    %76 = arith.mulf %72, %75 : vector<24x256xf32>
    %77 = math.erf %76 : vector<24x256xf32>
    %cst_29 = arith.constant 1.000000e+00 : f32
    %78 = vector.broadcast %cst_29 : f32 to vector<24x256xf32>
    %79 = arith.addf %78, %77 : vector<24x256xf32>
    %80 = arith.mulf %74, %79 : vector<24x256xf32>
    %81 = arith.truncf %80 : vector<24x256xf32> to vector<24x256xbf16>
    %c0_30 = arith.constant 0 : index
    %c0_31 = arith.constant 0 : index
    %82 = vector.load %arg5[%c0_30, %c0_31] : memref<256x128xbf16, #tpu.memory_space<vmem>>, vector<256x128xbf16>
    %cst_32 = arith.constant dense<0.000000e+00> : vector<24x128xf32>
    %83 = tpu.matmul %81, %82, %cst_32 {dimension_numbers = #tpu.dot_dimension_numbers<[1], [0], [0], [1], [0, 0, 1, 1], [], []>} : vector<24x256xbf16>, vector<256x128xbf16>, vector<24x128xf32> -> vector<24x128xf32>
    %84 = vector.broadcast %50 : vector<1x128xf32> to vector<24x128xf32>
    %85 = arith.addf %83, %84 : vector<24x128xf32>
    %c0_33 = arith.constant 0 : index
    %c1536 = arith.constant 1536 : index
    %86 = vector.load %arg2[%c0_33, %c1536] : memref<1x4224xf32, #tpu.memory_space<vmem>>, vector<1x128xf32>
    %c0_34 = arith.constant 0 : index
    %c1664 = arith.constant 1664 : index
    %87 = vector.load %arg2[%c0_34, %c1664] : memref<1x4224xf32, #tpu.memory_space<vmem>>, vector<1x128xf32>
    %c0_35 = arith.constant 0 : index
    %c1792 = arith.constant 1792 : index
    %88 = vector.load %arg2[%c0_35, %c1792] : memref<1x4224xf32, #tpu.memory_space<vmem>>, vector<1x64xf32>
    %cst_36 = arith.constant dense<0.000000e+00> : vector<24xf32>
    %89 = vector.multi_reduction <add>, %85, %cst_36 [1] : vector<24x128xf32> to vector<24xf32>
    %90 = vector.shape_cast %89 : vector<24xf32> to vector<24x1xf32>
    %cst_37 = arith.constant 1.280000e+02 : f32
    %91 = vector.broadcast %cst_37 : f32 to vector<24x1xf32>
    %92 = arith.divf %90, %91 : vector<24x1xf32>
    %93 = vector.broadcast %92 : vector<24x1xf32> to vector<24x128xf32>
    %94 = arith.subf %85, %93 : vector<24x128xf32>
    %95 = arith.mulf %94, %94 : vector<24x128xf32>
    %cst_38 = arith.constant dense<0.000000e+00> : vector<24xf32>
    %96 = vector.multi_reduction <add>, %95, %cst_38 [1] : vector<24x128xf32> to vector<24xf32>
    %97 = vector.shape_cast %96 : vector<24xf32> to vector<24x1xf32>
    %cst_39 = arith.constant 1.280000e+02 : f32
    %98 = vector.broadcast %cst_39 : f32 to vector<24x1xf32>
    %99 = arith.divf %97, %98 : vector<24x1xf32>
    %100 = vector.broadcast %92 : vector<24x1xf32> to vector<24x128xf32>
    %101 = arith.subf %85, %100 : vector<24x128xf32>
    %cst_40 = arith.constant 9.99999974E-6 : f32
    %102 = vector.broadcast %cst_40 : f32 to vector<24x1xf32>
    %103 = arith.addf %99, %102 : vector<24x1xf32>
    %104 = math.rsqrt %103 : vector<24x1xf32>
    %105 = vector.broadcast %104 : vector<24x1xf32> to vector<24x128xf32>
    %106 = arith.mulf %101, %105 : vector<24x128xf32>
    %107 = vector.broadcast %86 : vector<1x128xf32> to vector<24x128xf32>
    %108 = arith.mulf %106, %107 : vector<24x128xf32>
    %109 = vector.broadcast %87 : vector<1x128xf32> to vector<24x128xf32>
    %110 = arith.addf %108, %109 : vector<24x128xf32>
    %cst_41 = arith.constant 5.000000e-01 : f32
    %111 = vector.broadcast %cst_41 : f32 to vector<24x128xf32>
    %112 = arith.mulf %111, %110 : vector<24x128xf32>
    %cst_42 = arith.constant 0.707106769 : f32
    %113 = vector.broadcast %cst_42 : f32 to vector<24x128xf32>
    %114 = arith.mulf %110, %113 : vector<24x128xf32>
    %115 = math.erf %114 : vector<24x128xf32>
    %cst_43 = arith.constant 1.000000e+00 : f32
    %116 = vector.broadcast %cst_43 : f32 to vector<24x128xf32>
    %117 = arith.addf %116, %115 : vector<24x128xf32>
    %118 = arith.mulf %112, %117 : vector<24x128xf32>
    %119 = arith.truncf %118 : vector<24x128xf32> to vector<24x128xbf16>
    %c0_44 = arith.constant 0 : index
    %c0_45 = arith.constant 0 : index
    %120 = vector.load %arg6[%c0_44, %c0_45] : memref<128x64xbf16, #tpu.memory_space<vmem>>, vector<128x64xbf16>
    %cst_46 = arith.constant dense<0.000000e+00> : vector<24x64xf32>
    %121 = tpu.matmul %119, %120, %cst_46 {dimension_numbers = #tpu.dot_dimension_numbers<[1], [0], [0], [1], [0, 0, 1, 1], [], []>} : vector<24x128xbf16>, vector<128x64xbf16>, vector<24x64xf32> -> vector<24x64xf32>
    %122 = vector.broadcast %88 : vector<1x64xf32> to vector<24x64xf32>
    %123 = arith.addf %121, %122 : vector<24x64xf32>
    %c0_47 = arith.constant 0 : index
    %c1920 = arith.constant 1920 : index
    %124 = vector.load %arg2[%c0_47, %c1920] : memref<1x4224xf32, #tpu.memory_space<vmem>>, vector<1x64xf32>
    %c0_48 = arith.constant 0 : index
    %c2048 = arith.constant 2048 : index
    %125 = vector.load %arg2[%c0_48, %c2048] : memref<1x4224xf32, #tpu.memory_space<vmem>>, vector<1x64xf32>
    %c0_49 = arith.constant 0 : index
    %c2176 = arith.constant 2176 : index
    %126 = vector.load %arg2[%c0_49, %c2176] : memref<1x4224xf32, #tpu.memory_space<vmem>>, vector<1x32xf32>
    %cst_50 = arith.constant dense<0.000000e+00> : vector<24xf32>
    %127 = vector.multi_reduction <add>, %123, %cst_50 [1] : vector<24x64xf32> to vector<24xf32>
    %128 = vector.shape_cast %127 : vector<24xf32> to vector<24x1xf32>
    %cst_51 = arith.constant 6.400000e+01 : f32
    %129 = vector.broadcast %cst_51 : f32 to vector<24x1xf32>
    %130 = arith.divf %128, %129 : vector<24x1xf32>
    %131 = vector.broadcast %130 : vector<24x1xf32> to vector<24x64xf32>
    %132 = arith.subf %123, %131 : vector<24x64xf32>
    %133 = arith.mulf %132, %132 : vector<24x64xf32>
    %cst_52 = arith.constant dense<0.000000e+00> : vector<24xf32>
    %134 = vector.multi_reduction <add>, %133, %cst_52 [1] : vector<24x64xf32> to vector<24xf32>
    %135 = vector.shape_cast %134 : vector<24xf32> to vector<24x1xf32>
    %cst_53 = arith.constant 6.400000e+01 : f32
    %136 = vector.broadcast %cst_53 : f32 to vector<24x1xf32>
    %137 = arith.divf %135, %136 : vector<24x1xf32>
    %138 = vector.broadcast %130 : vector<24x1xf32> to vector<24x64xf32>
    %139 = arith.subf %123, %138 : vector<24x64xf32>
    %cst_54 = arith.constant 9.99999974E-6 : f32
    %140 = vector.broadcast %cst_54 : f32 to vector<24x1xf32>
    %141 = arith.addf %137, %140 : vector<24x1xf32>
    %142 = math.rsqrt %141 : vector<24x1xf32>
    %143 = vector.broadcast %142 : vector<24x1xf32> to vector<24x64xf32>
    %144 = arith.mulf %139, %143 : vector<24x64xf32>
    %145 = vector.broadcast %124 : vector<1x64xf32> to vector<24x64xf32>
    %146 = arith.mulf %144, %145 : vector<24x64xf32>
    %147 = vector.broadcast %125 : vector<1x64xf32> to vector<24x64xf32>
    %148 = arith.addf %146, %147 : vector<24x64xf32>
    %cst_55 = arith.constant 5.000000e-01 : f32
    %149 = vector.broadcast %cst_55 : f32 to vector<24x64xf32>
    %150 = arith.mulf %149, %148 : vector<24x64xf32>
    %cst_56 = arith.constant 0.707106769 : f32
    %151 = vector.broadcast %cst_56 : f32 to vector<24x64xf32>
    %152 = arith.mulf %148, %151 : vector<24x64xf32>
    %153 = math.erf %152 : vector<24x64xf32>
    %cst_57 = arith.constant 1.000000e+00 : f32
    %154 = vector.broadcast %cst_57 : f32 to vector<24x64xf32>
    %155 = arith.addf %154, %153 : vector<24x64xf32>
    %156 = arith.mulf %150, %155 : vector<24x64xf32>
    %157 = arith.truncf %156 : vector<24x64xf32> to vector<24x64xbf16>
    %c0_58 = arith.constant 0 : index
    %c0_59 = arith.constant 0 : index
    %158 = vector.load %arg7[%c0_58, %c0_59] : memref<64x32xbf16, #tpu.memory_space<vmem>>, vector<64x32xbf16>
    %cst_60 = arith.constant dense<0.000000e+00> : vector<24x32xf32>
    %159 = tpu.matmul %157, %158, %cst_60 {dimension_numbers = #tpu.dot_dimension_numbers<[1], [0], [0], [1], [0, 0, 1, 1], [], []>} : vector<24x64xbf16>, vector<64x32xbf16>, vector<24x32xf32> -> vector<24x32xf32>
    %160 = vector.broadcast %126 : vector<1x32xf32> to vector<24x32xf32>
    %161 = arith.addf %159, %160 : vector<24x32xf32>
    %c0_61 = arith.constant 0 : index
    %c2304 = arith.constant 2304 : index
    %162 = vector.load %arg2[%c0_61, %c2304] : memref<1x4224xf32, #tpu.memory_space<vmem>>, vector<1x32xf32>
    %c0_62 = arith.constant 0 : index
    %c2432 = arith.constant 2432 : index
    %163 = vector.load %arg2[%c0_62, %c2432] : memref<1x4224xf32, #tpu.memory_space<vmem>>, vector<1x32xf32>
    %c0_63 = arith.constant 0 : index
    %c2560 = arith.constant 2560 : index
    %164 = vector.load %arg2[%c0_63, %c2560] : memref<1x4224xf32, #tpu.memory_space<vmem>>, vector<1x64xf32>
    %cst_64 = arith.constant dense<0.000000e+00> : vector<24xf32>
    %165 = vector.multi_reduction <add>, %161, %cst_64 [1] : vector<24x32xf32> to vector<24xf32>
    %166 = vector.shape_cast %165 : vector<24xf32> to vector<24x1xf32>
    %cst_65 = arith.constant 3.200000e+01 : f32
    %167 = vector.broadcast %cst_65 : f32 to vector<24x1xf32>
    %168 = arith.divf %166, %167 : vector<24x1xf32>
    %169 = vector.broadcast %168 : vector<24x1xf32> to vector<24x32xf32>
    %170 = arith.subf %161, %169 : vector<24x32xf32>
    %171 = arith.mulf %170, %170 : vector<24x32xf32>
    %cst_66 = arith.constant dense<0.000000e+00> : vector<24xf32>
    %172 = vector.multi_reduction <add>, %171, %cst_66 [1] : vector<24x32xf32> to vector<24xf32>
    %173 = vector.shape_cast %172 : vector<24xf32> to vector<24x1xf32>
    %cst_67 = arith.constant 3.200000e+01 : f32
    %174 = vector.broadcast %cst_67 : f32 to vector<24x1xf32>
    %175 = arith.divf %173, %174 : vector<24x1xf32>
    %176 = vector.broadcast %168 : vector<24x1xf32> to vector<24x32xf32>
    %177 = arith.subf %161, %176 : vector<24x32xf32>
    %cst_68 = arith.constant 9.99999974E-6 : f32
    %178 = vector.broadcast %cst_68 : f32 to vector<24x1xf32>
    %179 = arith.addf %175, %178 : vector<24x1xf32>
    %180 = math.rsqrt %179 : vector<24x1xf32>
    %181 = vector.broadcast %180 : vector<24x1xf32> to vector<24x32xf32>
    %182 = arith.mulf %177, %181 : vector<24x32xf32>
    %183 = vector.broadcast %162 : vector<1x32xf32> to vector<24x32xf32>
    %184 = arith.mulf %182, %183 : vector<24x32xf32>
    %185 = vector.broadcast %163 : vector<1x32xf32> to vector<24x32xf32>
    %186 = arith.addf %184, %185 : vector<24x32xf32>
    %cst_69 = arith.constant 5.000000e-01 : f32
    %187 = vector.broadcast %cst_69 : f32 to vector<24x32xf32>
    %188 = arith.mulf %187, %186 : vector<24x32xf32>
    %cst_70 = arith.constant 0.707106769 : f32
    %189 = vector.broadcast %cst_70 : f32 to vector<24x32xf32>
    %190 = arith.mulf %186, %189 : vector<24x32xf32>
    %191 = math.erf %190 : vector<24x32xf32>
    %cst_71 = arith.constant 1.000000e+00 : f32
    %192 = vector.broadcast %cst_71 : f32 to vector<24x32xf32>
    %193 = arith.addf %192, %191 : vector<24x32xf32>
    %194 = arith.mulf %188, %193 : vector<24x32xf32>
    %195 = arith.truncf %194 : vector<24x32xf32> to vector<24x32xbf16>
    %c0_72 = arith.constant 0 : index
    %c0_73 = arith.constant 0 : index
    %196 = vector.load %arg8[%c0_72, %c0_73] : memref<32x64xbf16, #tpu.memory_space<vmem>>, vector<32x64xbf16>
    %cst_74 = arith.constant dense<0.000000e+00> : vector<24x64xf32>
    %197 = tpu.matmul %195, %196, %cst_74 {dimension_numbers = #tpu.dot_dimension_numbers<[1], [0], [0], [1], [0, 0, 1, 1], [], []>} : vector<24x32xbf16>, vector<32x64xbf16>, vector<24x64xf32> -> vector<24x64xf32>
    %198 = vector.broadcast %164 : vector<1x64xf32> to vector<24x64xf32>
    %199 = arith.addf %197, %198 : vector<24x64xf32>
    %c0_75 = arith.constant 0 : index
    %c2688 = arith.constant 2688 : index
    %200 = vector.load %arg2[%c0_75, %c2688] : memref<1x4224xf32, #tpu.memory_space<vmem>>, vector<1x64xf32>
    %c0_76 = arith.constant 0 : index
    %c2816 = arith.constant 2816 : index
    %201 = vector.load %arg2[%c0_76, %c2816] : memref<1x4224xf32, #tpu.memory_space<vmem>>, vector<1x64xf32>
    %c0_77 = arith.constant 0 : index
    %c2944 = arith.constant 2944 : index
    %202 = vector.load %arg2[%c0_77, %c2944] : memref<1x4224xf32, #tpu.memory_space<vmem>>, vector<1x128xf32>
    %cst_78 = arith.constant dense<0.000000e+00> : vector<24xf32>
    %203 = vector.multi_reduction <add>, %199, %cst_78 [1] : vector<24x64xf32> to vector<24xf32>
    %204 = vector.shape_cast %203 : vector<24xf32> to vector<24x1xf32>
    %cst_79 = arith.constant 6.400000e+01 : f32
    %205 = vector.broadcast %cst_79 : f32 to vector<24x1xf32>
    %206 = arith.divf %204, %205 : vector<24x1xf32>
    %207 = vector.broadcast %206 : vector<24x1xf32> to vector<24x64xf32>
    %208 = arith.subf %199, %207 : vector<24x64xf32>
    %209 = arith.mulf %208, %208 : vector<24x64xf32>
    %cst_80 = arith.constant dense<0.000000e+00> : vector<24xf32>
    %210 = vector.multi_reduction <add>, %209, %cst_80 [1] : vector<24x64xf32> to vector<24xf32>
    %211 = vector.shape_cast %210 : vector<24xf32> to vector<24x1xf32>
    %cst_81 = arith.constant 6.400000e+01 : f32
    %212 = vector.broadcast %cst_81 : f32 to vector<24x1xf32>
    %213 = arith.divf %211, %212 : vector<24x1xf32>
    %214 = vector.broadcast %206 : vector<24x1xf32> to vector<24x64xf32>
    %215 = arith.subf %199, %214 : vector<24x64xf32>
    %cst_82 = arith.constant 9.99999974E-6 : f32
    %216 = vector.broadcast %cst_82 : f32 to vector<24x1xf32>
    %217 = arith.addf %213, %216 : vector<24x1xf32>
    %218 = math.rsqrt %217 : vector<24x1xf32>
    %219 = vector.broadcast %218 : vector<24x1xf32> to vector<24x64xf32>
    %220 = arith.mulf %215, %219 : vector<24x64xf32>
    %221 = vector.broadcast %200 : vector<1x64xf32> to vector<24x64xf32>
    %222 = arith.mulf %220, %221 : vector<24x64xf32>
    %223 = vector.broadcast %201 : vector<1x64xf32> to vector<24x64xf32>
    %224 = arith.addf %222, %223 : vector<24x64xf32>
    %cst_83 = arith.constant 5.000000e-01 : f32
    %225 = vector.broadcast %cst_83 : f32 to vector<24x64xf32>
    %226 = arith.mulf %225, %224 : vector<24x64xf32>
    %cst_84 = arith.constant 0.707106769 : f32
    %227 = vector.broadcast %cst_84 : f32 to vector<24x64xf32>
    %228 = arith.mulf %224, %227 : vector<24x64xf32>
    %229 = math.erf %228 : vector<24x64xf32>
    %cst_85 = arith.constant 1.000000e+00 : f32
    %230 = vector.broadcast %cst_85 : f32 to vector<24x64xf32>
    %231 = arith.addf %230, %229 : vector<24x64xf32>
    %232 = arith.mulf %226, %231 : vector<24x64xf32>
    %233 = arith.truncf %232 : vector<24x64xf32> to vector<24x64xbf16>
    %c0_86 = arith.constant 0 : index
    %c0_87 = arith.constant 0 : index
    %234 = vector.load %arg9[%c0_86, %c0_87] : memref<64x128xbf16, #tpu.memory_space<vmem>>, vector<64x128xbf16>
    %cst_88 = arith.constant dense<0.000000e+00> : vector<24x128xf32>
    %235 = tpu.matmul %233, %234, %cst_88 {dimension_numbers = #tpu.dot_dimension_numbers<[1], [0], [0], [1], [0, 0, 1, 1], [], []>} : vector<24x64xbf16>, vector<64x128xbf16>, vector<24x128xf32> -> vector<24x128xf32>
    %236 = vector.broadcast %202 : vector<1x128xf32> to vector<24x128xf32>
    %237 = arith.addf %235, %236 : vector<24x128xf32>
    %c0_89 = arith.constant 0 : index
    %c3072 = arith.constant 3072 : index
    %238 = vector.load %arg2[%c0_89, %c3072] : memref<1x4224xf32, #tpu.memory_space<vmem>>, vector<1x128xf32>
    %c0_90 = arith.constant 0 : index
    %c3200 = arith.constant 3200 : index
    %239 = vector.load %arg2[%c0_90, %c3200] : memref<1x4224xf32, #tpu.memory_space<vmem>>, vector<1x128xf32>
    %c0_91 = arith.constant 0 : index
    %c3328 = arith.constant 3328 : index
    %240 = vector.load %arg2[%c0_91, %c3328] : memref<1x4224xf32, #tpu.memory_space<vmem>>, vector<1x256xf32>
    %cst_92 = arith.constant dense<0.000000e+00> : vector<24xf32>
    %241 = vector.multi_reduction <add>, %237, %cst_92 [1] : vector<24x128xf32> to vector<24xf32>
    %242 = vector.shape_cast %241 : vector<24xf32> to vector<24x1xf32>
    %cst_93 = arith.constant 1.280000e+02 : f32
    %243 = vector.broadcast %cst_93 : f32 to vector<24x1xf32>
    %244 = arith.divf %242, %243 : vector<24x1xf32>
    %245 = vector.broadcast %244 : vector<24x1xf32> to vector<24x128xf32>
    %246 = arith.subf %237, %245 : vector<24x128xf32>
    %247 = arith.mulf %246, %246 : vector<24x128xf32>
    %cst_94 = arith.constant dense<0.000000e+00> : vector<24xf32>
    %248 = vector.multi_reduction <add>, %247, %cst_94 [1] : vector<24x128xf32> to vector<24xf32>
    %249 = vector.shape_cast %248 : vector<24xf32> to vector<24x1xf32>
    %cst_95 = arith.constant 1.280000e+02 : f32
    %250 = vector.broadcast %cst_95 : f32 to vector<24x1xf32>
    %251 = arith.divf %249, %250 : vector<24x1xf32>
    %252 = vector.broadcast %244 : vector<24x1xf32> to vector<24x128xf32>
    %253 = arith.subf %237, %252 : vector<24x128xf32>
    %cst_96 = arith.constant 9.99999974E-6 : f32
    %254 = vector.broadcast %cst_96 : f32 to vector<24x1xf32>
    %255 = arith.addf %251, %254 : vector<24x1xf32>
    %256 = math.rsqrt %255 : vector<24x1xf32>
    %257 = vector.broadcast %256 : vector<24x1xf32> to vector<24x128xf32>
    %258 = arith.mulf %253, %257 : vector<24x128xf32>
    %259 = vector.broadcast %238 : vector<1x128xf32> to vector<24x128xf32>
    %260 = arith.mulf %258, %259 : vector<24x128xf32>
    %261 = vector.broadcast %239 : vector<1x128xf32> to vector<24x128xf32>
    %262 = arith.addf %260, %261 : vector<24x128xf32>
    %cst_97 = arith.constant 5.000000e-01 : f32
    %263 = vector.broadcast %cst_97 : f32 to vector<24x128xf32>
    %264 = arith.mulf %263, %262 : vector<24x128xf32>
    %cst_98 = arith.constant 0.707106769 : f32
    %265 = vector.broadcast %cst_98 : f32 to vector<24x128xf32>
    %266 = arith.mulf %262, %265 : vector<24x128xf32>
    %267 = math.erf %266 : vector<24x128xf32>
    %cst_99 = arith.constant 1.000000e+00 : f32
    %268 = vector.broadcast %cst_99 : f32 to vector<24x128xf32>
    %269 = arith.addf %268, %267 : vector<24x128xf32>
    %270 = arith.mulf %264, %269 : vector<24x128xf32>
    %271 = arith.truncf %270 : vector<24x128xf32> to vector<24x128xbf16>
    %c0_100 = arith.constant 0 : index
    %c0_101 = arith.constant 0 : index
    %272 = vector.load %arg10[%c0_100, %c0_101] : memref<128x256xbf16, #tpu.memory_space<vmem>>, vector<128x256xbf16>
    %cst_102 = arith.constant dense<0.000000e+00> : vector<24x256xf32>
    %273 = tpu.matmul %271, %272, %cst_102 {dimension_numbers = #tpu.dot_dimension_numbers<[1], [0], [0], [1], [0, 0, 1, 1], [], []>} : vector<24x128xbf16>, vector<128x256xbf16>, vector<24x256xf32> -> vector<24x256xf32>
    %274 = vector.broadcast %240 : vector<1x256xf32> to vector<24x256xf32>
    %275 = arith.addf %273, %274 : vector<24x256xf32>
    %c0_103 = arith.constant 0 : index
    %c3584 = arith.constant 3584 : index
    %276 = vector.load %arg2[%c0_103, %c3584] : memref<1x4224xf32, #tpu.memory_space<vmem>>, vector<1x256xf32>
    %c0_104 = arith.constant 0 : index
    %c3840 = arith.constant 3840 : index
    %277 = vector.load %arg2[%c0_104, %c3840] : memref<1x4224xf32, #tpu.memory_space<vmem>>, vector<1x256xf32>
    %c0_105 = arith.constant 0 : index
    %c4096 = arith.constant 4096 : index
    %278 = vector.load %arg2[%c0_105, %c4096] : memref<1x4224xf32, #tpu.memory_space<vmem>>, vector<1x128xf32>
    %cst_106 = arith.constant dense<0.000000e+00> : vector<24xf32>
    %279 = vector.multi_reduction <add>, %275, %cst_106 [1] : vector<24x256xf32> to vector<24xf32>
    %280 = vector.shape_cast %279 : vector<24xf32> to vector<24x1xf32>
    %cst_107 = arith.constant 2.560000e+02 : f32
    %281 = vector.broadcast %cst_107 : f32 to vector<24x1xf32>
    %282 = arith.divf %280, %281 : vector<24x1xf32>
    %283 = vector.broadcast %282 : vector<24x1xf32> to vector<24x256xf32>
    %284 = arith.subf %275, %283 : vector<24x256xf32>
    %285 = arith.mulf %284, %284 : vector<24x256xf32>
    %cst_108 = arith.constant dense<0.000000e+00> : vector<24xf32>
    %286 = vector.multi_reduction <add>, %285, %cst_108 [1] : vector<24x256xf32> to vector<24xf32>
    %287 = vector.shape_cast %286 : vector<24xf32> to vector<24x1xf32>
    %cst_109 = arith.constant 2.560000e+02 : f32
    %288 = vector.broadcast %cst_109 : f32 to vector<24x1xf32>
    %289 = arith.divf %287, %288 : vector<24x1xf32>
    %290 = vector.broadcast %282 : vector<24x1xf32> to vector<24x256xf32>
    %291 = arith.subf %275, %290 : vector<24x256xf32>
    %cst_110 = arith.constant 9.99999974E-6 : f32
    %292 = vector.broadcast %cst_110 : f32 to vector<24x1xf32>
    %293 = arith.addf %289, %292 : vector<24x1xf32>
    %294 = math.rsqrt %293 : vector<24x1xf32>
    %295 = vector.broadcast %294 : vector<24x1xf32> to vector<24x256xf32>
    %296 = arith.mulf %291, %295 : vector<24x256xf32>
    %297 = vector.broadcast %276 : vector<1x256xf32> to vector<24x256xf32>
    %298 = arith.mulf %296, %297 : vector<24x256xf32>
    %299 = vector.broadcast %277 : vector<1x256xf32> to vector<24x256xf32>
    %300 = arith.addf %298, %299 : vector<24x256xf32>
    %cst_111 = arith.constant 5.000000e-01 : f32
    %301 = vector.broadcast %cst_111 : f32 to vector<24x256xf32>
    %302 = arith.mulf %301, %300 : vector<24x256xf32>
    %cst_112 = arith.constant 0.707106769 : f32
    %303 = vector.broadcast %cst_112 : f32 to vector<24x256xf32>
    %304 = arith.mulf %300, %303 : vector<24x256xf32>
    %305 = math.erf %304 : vector<24x256xf32>
    %cst_113 = arith.constant 1.000000e+00 : f32
    %306 = vector.broadcast %cst_113 : f32 to vector<24x256xf32>
    %307 = arith.addf %306, %305 : vector<24x256xf32>
    %308 = arith.mulf %302, %307 : vector<24x256xf32>
    %309 = arith.truncf %308 : vector<24x256xf32> to vector<24x256xbf16>
    %c0_114 = arith.constant 0 : index
    %c0_115 = arith.constant 0 : index
    %310 = vector.load %arg11[%c0_114, %c0_115] : memref<256x128xbf16, #tpu.memory_space<vmem>>, vector<256x128xbf16>
    %cst_116 = arith.constant dense<0.000000e+00> : vector<24x128xf32>
    %311 = tpu.matmul %309, %310, %cst_116 {dimension_numbers = #tpu.dot_dimension_numbers<[1], [0], [0], [1], [0, 0, 1, 1], [], []>} : vector<24x256xbf16>, vector<256x128xbf16>, vector<24x128xf32> -> vector<24x128xf32>
    %312 = vector.broadcast %278 : vector<1x128xf32> to vector<24x128xf32>
    %313 = arith.addf %311, %312 : vector<24x128xf32>
    %c0_117 = arith.constant 0 : index
    %c0_118 = arith.constant 0 : index
    %314 = vector.load %arg12[%c0_117, %c0_118] : memref<24x128xf32, #tpu.memory_space<vmem>>, vector<24x128xf32>
    tpu.vector_store %arg12[%c0_117, %c0_118], %313 {strides = array<i32>} : memref<24x128xf32, #tpu.memory_space<vmem>>, vector<24x128xf32>,
    return
  }
  func.func @transform_0(%arg0: i32) -> (i32, i32) {
    %c0_i32 = arith.constant 0 : i32
    %c0_i32_0 = arith.constant 0 : i32
    return %arg0, %c0_i32 : i32, i32
  }
  func.func @transform_1(%arg0: i32) -> (i32, i32) {
    %c0_i32 = arith.constant 0 : i32
    %c0_i32_0 = arith.constant 0 : i32
    %c0_i32_1 = arith.constant 0 : i32
    return %c0_i32, %c0_i32_0 : i32, i32
  }
  func.func @transform_2(%arg0: i32) -> (i32, i32) {
    %c0_i32 = arith.constant 0 : i32
    %c0_i32_0 = arith.constant 0 : i32
    %c0_i32_1 = arith.constant 0 : i32
    return %c0_i32, %c0_i32_0 : i32, i32
  }
  func.func @transform_3(%arg0: i32) -> (i32, i32) {
    %c0_i32 = arith.constant 0 : i32
    %c0_i32_0 = arith.constant 0 : i32
    %c0_i32_1 = arith.constant 0 : i32
    return %c0_i32, %c0_i32_0 : i32, i32
  }
  func.func @transform_4(%arg0: i32) -> (i32, i32) {
    %c0_i32 = arith.constant 0 : i32
    %c0_i32_0 = arith.constant 0 : i32
    %c0_i32_1 = arith.constant 0 : i32
    return %c0_i32, %c0_i32_0 : i32, i32
  }
  func.func @transform_5(%arg0: i32) -> (i32, i32) {
    %c0_i32 = arith.constant 0 : i32
    %c0_i32_0 = arith.constant 0 : i32
    %c0_i32_1 = arith.constant 0 : i32
    return %c0_i32, %c0_i32_0 : i32, i32
  }
  func.func @transform_6(%arg0: i32) -> (i32, i32) {
    %c0_i32 = arith.constant 0 : i32
    %c0_i32_0 = arith.constant 0 : i32
    %c0_i32_1 = arith.constant 0 : i32
    return %c0_i32, %c0_i32_0 : i32, i32
  }
  func.func @transform_7(%arg0: i32) -> (i32, i32) {
    %c0_i32 = arith.constant 0 : i32
    %c0_i32_0 = arith.constant 0 : i32
    %c0_i32_1 = arith.constant 0 : i32
    return %c0_i32, %c0_i32_0 : i32, i32
  }
  func.func @transform_8(%arg0: i32) -> (i32, i32) {
    %c0_i32 = arith.constant 0 : i32
    %c0_i32_0 = arith.constant 0 : i32
    %c0_i32_1 = arith.constant 0 : i32
    return %c0_i32, %c0_i32_0 : i32, i32
  }
  func.func @transform_9(%arg0: i32) -> (i32, i32) {
    %c0_i32 = arith.constant 0 : i32
    %c0_i32_0 = arith.constant 0 : i32
    %c0_i32_1 = arith.constant 0 : i32
    return %c0_i32, %c0_i32_0 : i32, i32
  }
  func.func @transform_10(%arg0: i32) -> (i32, i32) {
    %c0_i32 = arith.constant 0 : i32
    %c0_i32_0 = arith.constant 0 : i32
    %c0_i32_1 = arith.constant 0 : i32
    return %c0_i32, %c0_i32_0 : i32, i32
  }
  func.func @transform_11(%arg0: i32) -> (i32, i32) {
    %c0_i32 = arith.constant 0 : i32
    %c0_i32_0 = arith.constant 0 : i32
    return %arg0, %c0_i32 : i32, i32
  }
}

</mosaic_0001>

<bundles_post_ra>
// kernel: tpu_custom_call.1
= control target key start
LH: loop header
LB: loop body
LE: loop exit
PB: predicated region body
PF: predicated region fallthrough
CT: control target
= control target key end

     0   :  { %16 = vsyncpa [#allocation3], 0  ;;  %s3335_s0 = inlined_call_operand.hbm [shape: bf16[8,128], index: 0, kind: input, shape index: {}]   ;;  %s3336_s1 = inlined_call_operand.hbm [shape: f32[1,4224], index: 1, kind: input, shape index: {}]   ;;  %s3337_s2 = inlined_call_operand.hbm [shape: bf16[128,384], index: 2, kind: input, shape index: {}]   ;;  %s3338_s3 = inlined_call_operand.vmem [shape: bf16[128,256], index: 3, kind: input, shape index: {}]   ;;  %s3339_s4 = inlined_call_operand.hbm [shape: bf16[256,128], index: 4, kind: input, shape index: {}]   ;;  %s3340_s5 = inlined_call_operand.vmem [shape: bf16[128,64], index: 5, kind: input, shape index: {}]   ;;  %s3341_s6 = inlined_call_operand.vmem [shape: bf16[64,32], index: 6, kind: input, shape index: {}]   ;;  %s3342_s7 = inlined_call_operand.hbm [shape: bf16[32,64], index: 7, kind: input, shape index: {}]   ;;  %s3343_s8 = inlined_call_operand.hbm [shape: bf16[64,128], index: 8, kind: input, shape index: {}]   ;;  %s3344_s9 = inlined_call_operand.hbm [shape: bf16[128,256], index: 9, kind: input, shape index: {}]   ;;  %s3345_s10 = inlined_call_operand.hbm [shape: bf16[256,128], index: 10, kind: input, shape index: {}]   ;;  %s3346_s11 = inlined_call_operand.hbm [shape: f32[24,128], index: 11, kind: output, shape index: {}]  }
   0x1   :  { %17 = vsyncpa [#allocation6], 0 }
   0x2   :  { %18 = vsyncpa [#allocation9], 0 }
   0x3   :  { %19 = vsyncpa [#allocation12], 0 }
   0x4   :  { %20 = vsyncpa [#allocation15], 0 }
   0x5   :  { %21 = vsyncpa [#allocation4], 0  ;;  %s2933_s17 = smov [#allocation5]   ;;  %s2934_s19 = smov [#allocation8]  }
   0x6   :  { %s38_s18 = sshll.u32 %s2933_s17, 4  ;;  %s61_s20 = sshll.u32 %s2934_s19, 4  ;;  %s39_s18 = int_to_ptr.vmem [resolvable:$true] %s38_s18  ;;  %s3011_s20 = int_to_ptr.vmem [resolvable:$true] %s61_s20 }
   0x7   :  { %s2723_s23 = scalar_lea.hbm %s3336_s1, 528 }
   0x8   :  { %p2724_p0 = scmp.ne.s32.totalorder %s3336_s1, %s2723_s23  ;;  %p2727_p1 = scmp.lt.u32.totalorder %s2723_s23, %s3336_s1 }
   0xa   :  { %p2729_p2 = pnand %p2727_p1, %p2724_p0 }
   0xc   :  { %2732 = shalt.err (!%p2729_p2)
}
   0xd   :  { %s2733_s28 = scalar_lea.vmem %s39_s18, 528  ;;  %s2737_s29 = scalar_lea.vmem %s39_s18, 544 }
   0xe   :  { %p2734_p3 = scmp.ne.s32.totalorder %s39_s18, %s2733_s28  ;;  %p2738_p4 = scmp.lt.s32.totalorder %s39_s18, %s39_s18 }
   0xf   :  { %p2739_p5 = scmp.lt.s32.totalorder %s2737_s29, %s2733_s28 }
  0x11   :  { %p2740_p6 = por %p2739_p5, %p2738_p4 }
  0x13   :  { %p2741_p7 = pnand %p2740_p6, %p2734_p3 }
  0x15   :  { %2744 = shalt.err (!%p2741_p7)
}
  0x16   :  { %41 = dma.hbm_to_vmem [thread:$0]  %s3336_s1, 528, %s39_s18, [#allocation6]  }
  0x17   :  { %s2745_s15 = scalar_lea.hbm %s3339_s4, 2048 }
  0x18   :  { %p2746_p8 = scmp.ne.s32.totalorder %s3339_s4, %s2745_s15  ;;  %p2749_p9 = scmp.lt.u32.totalorder %s2745_s15, %s3339_s4 }
  0x1a   :  { %p2751_p10 = pnand %p2749_p9, %p2746_p8 }
  0x1c   :  { %2754 = shalt.err (!%p2751_p10)
}
  0x1d   :  { %s2755_s22 = scalar_lea.vmem %s3011_s20, 2048  ;;  %p2760_p12 = scmp.lt.s32.totalorder %s3011_s20, %s3011_s20 }
  0x1e   :  { %p2756_p11 = scmp.ne.s32.totalorder %s3011_s20, %s2755_s22  ;;  %p2761_p13 = scmp.lt.s32.totalorder %s2755_s22, %s2755_s22 }
  0x20   :  { %p2762_p0 = por %p2761_p13, %p2760_p12 }
  0x22   :  { %p2763_p1 = pnand %p2762_p0, %p2756_p11 }
  0x24   :  { %2766 = shalt.err (!%p2763_p1)
}
  0x25   :  { %s2935_s1 = smov 64   ;;  %s2936_s18 = smov 4  }
  0x26   :  { %67 = dma.hbm_to_vmem [thread:$0]  %s3339_s4, 2048, %s3011_s20, [#allocation9], %s2935_s1, %s2935_s1, %s2936_s18  }
  0x27   :  { %s2937_s25 = smov [#allocation11]   ;;  %s2938_s27 = smov [#allocation2]  }
  0x28   :  { %s89_s26 = sshll.u32 %s2937_s25, 4  ;;  %s28_s28 = sshll.u32 %s2938_s27, 4  ;;  %s90_s26 = int_to_ptr.vmem [resolvable:$true] %s89_s26  ;;  %s29_s28 = int_to_ptr.vmem [resolvable:$true] %s28_s28 }
  0x29   :  { %s2767_s12 = scalar_lea.hbm %s3343_s8, 512 }
  0x2a   :  { %p2768_p2 = scmp.ne.s32.totalorder %s3343_s8, %s2767_s12  ;;  %p2771_p3 = scmp.lt.u32.totalorder %s2767_s12, %s3343_s8 }
  0x2c   :  { %p2773_p4 = pnand %p2771_p3, %p2768_p2 }
  0x2e   :  { %2776 = shalt.err (!%p2773_p4)
}
  0x2f   :  { %s2777_s4 = scalar_lea.vmem %s90_s26, 512  ;;  %p2782_p6 = scmp.lt.s32.totalorder %s90_s26, %s90_s26 }
  0x30   :  { %p2778_p5 = scmp.ne.s32.totalorder %s90_s26, %s2777_s4  ;;  %p2783_p7 = scmp.lt.s32.totalorder %s2777_s4, %s2777_s4 }
  0x32   :  { %p2784_p8 = por %p2783_p7, %p2782_p6 }
  0x34   :  { %p2785_p9 = pnand %p2784_p8, %p2778_p5 }
  0x36   :  { %2788 = shalt.err (!%p2785_p9)
}
  0x37   :  { %95 = dma.hbm_to_vmem [thread:$0]  %s3343_s8, 512, %s90_s26, [#allocation12], %s2935_s1, %s2935_s1, %s2936_s18  }
  0x38   :  { %s2789_s22 = scalar_lea.hbm %s3335_s0, 64 }
  0x39   :  { %p2790_p10 = scmp.ne.s32.totalorder %s3335_s0, %s2789_s22  ;;  %p2793_p11 = scmp.lt.u32.totalorder %s2789_s22, %s3335_s0 }
  0x3b   :  { %p2795_p12 = pnand %p2793_p11, %p2790_p10 }
  0x3d   :  { %2798 = shalt.err (!%p2795_p12)
}
  0x3e   :  { %s2799_s29 = scalar_lea.vmem %s29_s28, 64  ;;  %p2804_p0 = scmp.lt.s32.totalorder %s29_s28, %s29_s28 }
  0x3f   :  { %p2800_p13 = scmp.ne.s32.totalorder %s29_s28, %s2799_s29  ;;  %p2805_p1 = scmp.lt.s32.totalorder %s2799_s29, %s2799_s29 }
  0x41   :  { %p2806_p2 = por %p2805_p1, %p2804_p0 }
  0x43   :  { %p2807_p3 = pnand %p2806_p2, %p2800_p13 }
  0x45   :  { %2810 = shalt.err (!%p2807_p3)
}
  0x46   :  { %31 = dma.hbm_to_vmem [thread:$0]  %s3335_s0, 64, %s29_s28, [#allocation3]  }
  0x47   :  { %s2939_s30 = smov [#allocation7]   ;;  %s2811_s15 = scalar_lea.hbm %s3337_s2, 3072 }
  0x48   :  { %s47_s12 = sshll.u32 %s2939_s30, 4  ;;  %p2812_p4 = scmp.ne.s32.totalorder %s3337_s2, %s2811_s15  ;;  %s48_s12 = int_to_ptr.vmem [resolvable:$true] %s47_s12 }
  0x49   :  { %p2815_p5 = scmp.lt.u32.totalorder %s2811_s15, %s3337_s2 }
  0x4b   :  { %p2817_p6 = pnand %p2815_p5, %p2812_p4 }
  0x4d   :  { %2820 = shalt.err (!%p2817_p6)
}
  0x4e   :  { %s2821_s19 = scalar_lea.vmem %s48_s12, 3072  ;;  %p2826_p8 = scmp.lt.s32.totalorder %s48_s12, %s48_s12 }
  0x4f   :  { %p2822_p7 = scmp.ne.s32.totalorder %s48_s12, %s2821_s19  ;;  %p2827_p9 = scmp.lt.s32.totalorder %s2821_s19, %s2821_s19 }
  0x51   :  { %p2828_p10 = por %p2827_p9, %p2826_p8 }
  0x53   :  { %p2829_p11 = pnand %p2828_p10, %p2822_p7 }
  0x55   :  { %2832 = shalt.err (!%p2829_p11)
}
  0x56   :  { %s2940_s0 = smov 192   ;;  %s2941_s28 = smov 12  }
  0x57   :  { %53 = dma.hbm_to_vmem [thread:$0]  %s3337_s2, 3072, %s48_s12, [#allocation6], %s2940_s0, %s2940_s0, %s2941_s28  }
  0x58   :  { %s2942_s23 = smov [#allocation10]   ;;  %s2943_s25 = smov [#allocation13]  }
  0x59   :  { %s77_s24 = sshll.u32 %s2942_s23, 4  ;;  %s101_s27 = sshll.u32 %s2943_s25, 4  ;;  %s78_s24 = int_to_ptr.vmem [resolvable:$true] %s77_s24  ;;  %s102_s27 = int_to_ptr.vmem [resolvable:$true] %s101_s27 }
  0x5a   :  { %s2833_s26 = scalar_lea.hbm %s3342_s7, 256 }
  0x5b   :  { %p2834_p12 = scmp.ne.s32.totalorder %s3342_s7, %s2833_s26  ;;  %p2837_p13 = scmp.lt.u32.totalorder %s2833_s26, %s3342_s7 }
  0x5d   :  { %p2839_p0 = pnand %p2837_p13, %p2834_p12 }
  0x5f   :  { %2842 = shalt.err (!%p2839_p0)
}
  0x60   :  { %s2843_s2 = scalar_lea.vmem %s78_s24, 256  ;;  %p2848_p2 = scmp.lt.s32.totalorder %s78_s24, %s78_s24 }
  0x61   :  { %p2844_p1 = scmp.ne.s32.totalorder %s78_s24, %s2843_s2  ;;  %p2849_p3 = scmp.lt.s32.totalorder %s2843_s2, %s2843_s2 }
  0x63   :  { %p2850_p4 = por %p2849_p3, %p2848_p2 }
  0x65   :  { %p2851_p5 = pnand %p2850_p4, %p2844_p1 }
  0x67   :  { %2854 = shalt.err (!%p2851_p5)
}
  0x68   :  { %83 = dma.hbm_to_vmem [thread:$0]  %s3342_s7, 256, %s78_s24, [#allocation9], %s2935_s1, %s2935_s1, %s2936_s18  }
  0x69   :  { %s2855_s17 = scalar_lea.hbm %s3344_s9, 2048 }
  0x6a   :  { %p2856_p6 = scmp.ne.s32.totalorder %s3344_s9, %s2855_s17  ;;  %p2859_p7 = scmp.lt.u32.totalorder %s2855_s17, %s3344_s9 }
  0x6c   :  { %p2861_p8 = pnand %p2859_p7, %p2856_p6 }
  0x6e   :  { %2864 = shalt.err (!%p2861_p8)
}
  0x6f   :  { %s2865_s22 = scalar_lea.vmem %s102_s27, 2048  ;;  %p2870_p10 = scmp.lt.s32.totalorder %s102_s27, %s102_s27 }
  0x70   :  { %p2866_p9 = scmp.ne.s32.totalorder %s102_s27, %s2865_s22  ;;  %p2871_p11 = scmp.lt.s32.totalorder %s2865_s22, %s2865_s22 }
  0x72   :  { %p2872_p12 = por %p2871_p11, %p2870_p10 }
  0x74   :  { %p2873_p13 = pnand %p2872_p12, %p2866_p9 }
  0x76   :  { %2876 = shalt.err (!%p2873_p13)
}
  0x77   :  { %s2944_s7 = smov 128   ;;  %s2945_s23 = smov 8  }
  0x78   :  { %107 = dma.hbm_to_vmem [thread:$0]  %s3344_s9, 2048, %s102_s27, [#allocation12], %s2944_s7, %s2944_s7, %s2945_s23  }
  0x79   :  { %s2946_s29 = smov [#allocation14]   ;;  %s2877_s13 = scalar_lea.hbm %s3345_s10, 2048 }
  0x7a   :  { %s113_s8 = sshll.u32 %s2946_s29, 4  ;;  %p2878_p0 = scmp.ne.s32.totalorder %s3345_s10, %s2877_s13  ;;  %s114_s8 = int_to_ptr.vmem [resolvable:$true] %s113_s8 }
  0x7b   :  { %p2881_p1 = scmp.lt.u32.totalorder %s2877_s13, %s3345_s10 }
  0x7d   :  { %p2883_p2 = pnand %p2881_p1, %p2878_p0 }
  0x7f   :  { %2886 = shalt.err (!%p2883_p2)
}
  0x80   :  { %s2887_s16 = scalar_lea.vmem %s114_s8, 2048  ;;  %p2892_p4 = scmp.lt.s32.totalorder %s114_s8, %s114_s8 }
  0x81   :  { %p2888_p3 = scmp.ne.s32.totalorder %s114_s8, %s2887_s16  ;;  %p2893_p5 = scmp.lt.s32.totalorder %s2887_s16, %s2887_s16 }
  0x83   :  { %p2894_p6 = por %p2893_p5, %p2892_p4 }
  0x85   :  { %p2895_p7 = pnand %p2894_p6, %p2888_p3 }
  0x87   :  { %2898 = shalt.err (!%p2895_p7)
}
  0x88   :  { %119 = dma.hbm_to_vmem [thread:$0]  %s3345_s10, 2048, %s114_s8, [#allocation15], %s2935_s1, %s2935_s1, %s2936_s18  }
  0x89   :  { %2921 = dma.done.wait [#allocation3], 64  }
  0x8a   :  { %2922 = vsyncadd [#allocation3], 4294967232 }
  0x8b   :  { %2923 = dma.done.wait [#allocation6], 3600  }
  0x8c   :  { %2924 = vsyncadd [#allocation6], 4294963696 }
  0x8d   :  { %2925 = dma.done.wait [#allocation9], 2304  }
  0x8e   :  { %2926 = vsyncadd [#allocation9], 4294964992 }
  0x8f   :  { %2927 = dma.done.wait [#allocation12], 2560  }
  0x90   :  { %2928 = vsyncadd [#allocation12], 4294964736 }
  0x91   :  { %2929 = dma.done.wait [#allocation15], 2048  }
  0x92   :  { %2930 = vsyncadd [#allocation15], 4294965248  ;;  %v2947_v0 = vmov 0.0   ;;  %vm2948_vm0 = vmmov 0   ;;  %v2949_v1 = vmov 0   ;;  %v180_v27 = vlaneseq }
  0x93   :  { %2395 = vmatprep.subr.bf16.mxu1 %v2947_v0  ;;  %2411 = vmatprep.mubr.msk.bf16.mxu1 %vm2948_vm0, %v2947_v0  ;;  %v2485_v2 = vld [vmem:[#allocation7 + $0x4] ss:$12 sps:$4 sm:$0xff]   ;;  %v2487_v3 = vld [vmem:[#allocation7 + $0x8] ss:$12 sps:$4 sm:$0xff]   ;;  %v2488_v4 = vld [vmem:[#allocation7] ss:$12 sps:$4 sm:$0xff]  }
  0x94   :  { %355 = vmatprep.mubr.bf16.mxu0 %v2949_v1  ;;  %323 = vmatprep.subr.bf16.mxu0 %v2485_v2  ;;  %v2489_v5 = vld [vmem:[#allocation7 + $0x1c] ss:$12 sps:$4 sm:$0xff]   ;;  %v2491_v6 = vld [vmem:[#allocation7 + $0x20] ss:$12 sps:$4 sm:$0xff]   ;;  %v2492_v7 = vld [vmem:[#allocation7 + $0x18] ss:$12 sps:$4 sm:$0xff]  }
  0x95   :  { %2396 = vmatpush3.bf16.msra.mxu1 %v2487_v3  ;;  %324 = vmatpush1.bf16.msra.mxu0 %v2488_v4  ;;  %v2493_v8 = vld [vmem:[#allocation7 + $0x34] ss:$12 sps:$4 sm:$0xff]   ;;  %v2495_v9 = vld [vmem:[#allocation7 + $0x38] ss:$12 sps:$4 sm:$0xff]   ;;  %v2496_v10 = vld [vmem:[#allocation7 + $0x30] ss:$12 sps:$4 sm:$0xff]  }
  0x96   :  { %2397 = vmatprep.subr.bf16.mxu1 %v2947_v0  ;;  %325 = vmatprep.subr.bf16.mxu0 %v2489_v5  ;;  %v2497_v11 = vld [vmem:[#allocation7 + $0x4c] ss:$12 sps:$4 sm:$0xff]   ;;  %v2499_v12 = vld [vmem:[#allocation7 + $0x50] ss:$12 sps:$4 sm:$0xff]   ;;  %v2500_v13 = vld [vmem:[#allocation7 + $0x48] ss:$12 sps:$4 sm:$0xff]  }
  0x97   :  { %v2501_v14 = vld [vmem:[#allocation7 + $0x64] ss:$12 sps:$4 sm:$0xff]   ;;  %v2503_v15 = vld [vmem:[#allocation7 + $0x68] ss:$12 sps:$4 sm:$0xff]   ;;  %v2504_v16 = vld [vmem:[#allocation7 + $0x60] ss:$12 sps:$4 sm:$0xff]  }
  0x98   :  { %v2505_v17 = vld [vmem:[#allocation7 + $0x7c] ss:$12 sps:$4 sm:$0xff]   ;;  %v2507_v18 = vld [vmem:[#allocation7 + $0x80] ss:$12 sps:$4 sm:$0xff]   ;;  %v2508_v19 = vld [vmem:[#allocation7 + $0x78] ss:$12 sps:$4 sm:$0xff]  }
  0x99   :  { %2398 = vmatpush3.bf16.msra.mxu1 %v2491_v6  ;;  %326 = vmatpush1.bf16.msra.mxu0 %v2492_v7  ;;  %v2509_v20 = vld [vmem:[#allocation7 + $0x94] ss:$12 sps:$4 sm:$0xff]   ;;  %v2511_v21 = vld [vmem:[#allocation7 + $0x98] ss:$12 sps:$4 sm:$0xff]   ;;  %v2512_v22 = vld [vmem:[#allocation7 + $0x90] ss:$12 sps:$4 sm:$0xff]  }
  0x9a   :  { %2399 = vmatprep.subr.bf16.mxu1 %v2947_v0  ;;  %327 = vmatprep.subr.bf16.mxu0 %v2493_v8  ;;  %v2513_v23 = vld [vmem:[#allocation7 + $0xac] ss:$12 sps:$4 sm:$0xff]   ;;  %v2515_v24 = vld [vmem:[#allocation7 + $0xb0] ss:$12 sps:$4 sm:$0xff]   ;;  %v2516_v25 = vld [vmem:[#allocation7 + $0xa8] ss:$12 sps:$4 sm:$0xff]  }
  0x9b   :  { %v145_v26 = vld [vmem:[#allocation2] sm:$0xf]  ;;  %v181_v28 = vshrl.u32 %v180_v27, 7  ;;  %v178_v30 = vld [vmem:[#allocation5] sm:$0x7]  ;;  %vm1128_vm1 = vcmask 523264  }
  0x9c   :  { %v2519_v59 = vld [vmem:[%s3338_s3 + $0x4] ss:$8 sps:$4 sm:$0xff]   ;;  %v2517_v60 = vld [vmem:[%s3338_s3] ss:$8 sps:$4 sm:$0xff]   ;;  %v2522_v61 = vld [vmem:[%s3338_s3 + $0x14] ss:$8 sps:$4 sm:$0xff]  }
  0x9d   :  { %2400 = vmatpush3.bf16.msra.mxu1 %v2495_v9  ;;  %328 = vmatpush1.bf16.msra.mxu0 %v2496_v10  ;;  %v190_v29 = vsub.s32 2, %v181_v28  ;;  %v3131_v31 = vsub.s32 0, %v181_v28  ;;  %v3133_v33 = vsub.s32 1, %v181_v28  ;;  %v2520_v62 = vld [vmem:[%s3338_s3 + $0x10] ss:$8 sps:$4 sm:$0xff]   ;;  %vm1299_vm2 = vcmask 261120  }
  0x9e   :  { %2401 = vmatprep.subr.bf16.mxu1 %v2947_v0  ;;  %329 = vmatprep.subr.bf16.mxu0 %v2497_v11  ;;  %v2525_v63 = vld [vmem:[%s3338_s3 + $0x24] ss:$8 sps:$4 sm:$0xff]   ;;  %v2526_v2 = vld [vmem:[%s3338_s3 + $0x30] ss:$8 sps:$4 sm:$0xff]   ;;  %v2528_v3 = vld [vmem:[%s3338_s3 + $0x34] ss:$8 sps:$4 sm:$0xff]  }
  0x9f   :  { %v191_v32 = vrot.slane %v178_v30, %v190_v29  ;;  %v183_v34 = vrot.slane %v178_v30, %v3131_v31  ;;  %v187_v40 = vrot.slane %v178_v30, %v3133_v33  ;;  %v2531_v4 = vld [vmem:[%s3338_s3 + $0x44] ss:$8 sps:$4 sm:$0xff]   ;;  %v2529_v5 = vld [vmem:[%s3338_s3 + $0x40] ss:$8 sps:$4 sm:$0xff]   ;;  %v2534_v6 = vld [vmem:[%s3338_s3 + $0x54] ss:$8 sps:$4 sm:$0xff]  }
  0xa0   :  { %v2532_v7 = vld [vmem:[%s3338_s3 + $0x50] ss:$8 sps:$4 sm:$0xff]   ;;  %v2537_v8 = vld [vmem:[%s3338_s3 + $0x64] ss:$8 sps:$4 sm:$0xff]   ;;  %v2535_v9 = vld [vmem:[%s3338_s3 + $0x60] ss:$8 sps:$4 sm:$0xff]  }
  0xa1   :  { %2402 = vmatpush3.bf16.msra.mxu1 %v2499_v12  ;;  %330 = vmatpush1.bf16.msra.mxu0 %v2500_v13  ;;  %v2540_v10 = vld [vmem:[%s3338_s3 + $0x74] ss:$8 sps:$4 sm:$0xff]   ;;  %v2538_v11 = vld [vmem:[%s3338_s3 + $0x70] ss:$8 sps:$4 sm:$0xff]  }
  0xa2   :  { %2403 = vmatprep.subr.bf16.mxu1 %v2947_v0  ;;  %331 = vmatprep.subr.bf16.mxu0 %v2501_v14 }
  0xa5   :  { %2404 = vmatpush3.bf16.msra.mxu1 %v2503_v15  ;;  %332 = vmatpush1.bf16.msra.mxu0 %v2504_v16 }
  0xa6   :  { %2405 = vmatprep.subr.bf16.mxu1 %v2947_v0  ;;  %333 = vmatprep.subr.bf16.mxu0 %v2505_v17 }
  0xa9   :  { %2406 = vmatpush3.bf16.msra.mxu1 %v2507_v18  ;;  %334 = vmatpush1.bf16.msra.mxu0 %v2508_v19 }
  0xaa   :  { %2407 = vmatprep.subr.bf16.mxu1 %v2947_v0  ;;  %335 = vmatprep.subr.bf16.mxu0 %v2509_v20 }
  0xad   :  { %2408 = vmatpush3.bf16.msra.mxu1 %v2511_v21  ;;  %336 = vmatpush1.bf16.msra.mxu0 %v2512_v22  ;;  %v2198_v22 = vld [vmem:[#allocation5 + $0x3] ss:$0 sm:$0xff] }
  0xae   :  { %2409 = vmatprep.subr.bf16.mxu1 %v2947_v0  ;;  %337 = vmatprep.subr.bf16.mxu0 %v2513_v23  ;;  %v2523_v0 = vld [vmem:[%s3338_s3 + $0x20] ss:$8 sps:$4 sm:$0xff]  }
  0xb1   :  { %2410 = vmatpush3.bf16.msra.mxu1 %v2515_v24  ;;  %338 = vmatpush1.bf16.msra.mxu0 %v2516_v25  ;;  %v2199_v24 = vld [vmem:[#allocation5 + $0x4] ss:$0 sm:$0xff] }
  0xb2   :  { %583 = vmatprep.subr.bf16.mxu0 %v2519_v59 }
  0xb4   :  { %2412 = vmatmul.mubr.bf16.vlgmr.msra.gmra.mrb[0].mxu1 %v145_v26  ;;  %356 = vmatmul.mubr.bf16.vlgmr.msra.gmra.mrb[0].mxu0 %v145_v26 }
  0xb5   :  { %615 = vmatprep.mubr.bf16.mxu0 %v2949_v1  ;;  %584 = vmatpush1.bf16.msra.mxu0 %v2517_v60 }
  0xb6   :  { %585 = vmatprep.subr.bf16.mxu0 %v2522_v61 }
  0xb9   :  { %586 = vmatpush1.bf16.msra.mxu0 %v2520_v62 }
  0xba   :  { %587 = vmatprep.subr.bf16.mxu0 %v2525_v63 }
  0xbd   :  { %588 = vmatpush1.bf16.msra.mxu0 %v2523_v0 }
  0xbe   :  { %589 = vmatprep.subr.bf16.mxu0 %v2528_v3 }
  0xc1   :  { %590 = vmatpush1.bf16.msra.mxu0 %v2526_v2 }
  0xc2   :  { %591 = vmatprep.subr.bf16.mxu0 %v2531_v4 }
  0xc5   :  { %592 = vmatpush1.bf16.msra.mxu0 %v2529_v5 }
  0xc6   :  { %593 = vmatprep.subr.bf16.mxu0 %v2534_v6 }
  0xc9   :  { %594 = vmatpush1.bf16.msra.mxu0 %v2532_v7 }
  0xca   :  { %595 = vmatprep.subr.bf16.mxu0 %v2537_v8 }
  0xcd   :  { %596 = vmatpush1.bf16.msra.mxu0 %v2535_v9 }
  0xce   :  { %597 = vmatprep.subr.bf16.mxu0 %v2540_v10 }
  0xd1   :  { %598 = vmatpush1.bf16.msra.mxu0 %v2538_v11 }
 0x187   :  { %v398_v35 = vpop.f32.mrb[0].mxu1  ;;  %v357_v37 = vpop.f32.mrb[0].mxu0 }
 0x188   :  { %v399_v36 = vadd.f32 %v398_v35, %v191_v32  ;;  %v2413_v38 = vpop.f32.mrb[1].mxu1  ;;  %v358_v39 = vadd.f32 %v357_v37, %v183_v34  ;;  %v359_v41 = vpop.f32.mrb[1].mxu0 }
 0x189   :  { %v401_v42 = vpop.f32.mrb[2].mxu1  ;;  %v361_v43 = vpop.f32.mrb[2].mxu0  ;;  %v360_v46 = vadd.f32 %v359_v41, %v187_v40 }
 0x18a   :  { %411 = vadd.xlane.f32.xlu1 %v399_v36  ;;  %v2414_v44 = vpop.f32.mrb[3].mxu1  ;;  %v362_v45 = vpop.f32.mrb[3].mxu0  ;;  %407 = vadd.xlane.f32.xlu0 %v358_v39 }
 0x18e   :  { %409 = vadd.xlane.f32.xlu0 %v360_v46 }
 0x217   :  { %v412_v47 = vpop.xlane.xlu1 %411  ;;  %v408_v48 = vpop.xlane.xlu0 %407 }
 0x218   :  { %v416_v49 = vmul.f32 0.0078125, %v412_v47  ;;  %v414_v50 = vmul.f32 0.0078125, %v408_v48 }
 0x21a   :  { %v417_v51 = vsub.f32 %v358_v39, %v414_v50  ;;  %v419_v53 = vsub.f32 %v399_v36, %v416_v49 }
 0x21b   :  { %v410_v52 = vpop.xlane.xlu0 %409 }
 0x21c   :  { %v415_v54 = vmul.f32 0.0078125, %v410_v52  ;;  %v420_v55 = vmul.f32 %v417_v51, %v417_v51  ;;  %v422_v57 = vmul.f32 %v419_v53, %v419_v53 }
 0x21e   :  { %v418_v56 = vsub.f32 %v360_v46, %v415_v54  ;;  %423 = vadd.xlane.f32.xlu1 %v420_v55  ;;  %v406_v54 = vld [vmem:[#allocation5 + $0x5] sm:$0x3] }
 0x21f   :  { %v496_v55 = vrot.slane %v406_v54, %v3131_v31 }
 0x220   :  { %v421_v58 = vmul.f32 %v418_v56, %v418_v56 }
 0x222   :  { %427 = vadd.xlane.f32.xlu1 %v422_v57  ;;  %425 = vadd.xlane.f32.xlu0 %v421_v58 }
 0x2ab   :  { %v424_v12 = vpop.xlane.xlu1 %423 }
 0x2ac   :  { %v429_v13 = vmul.f32 0.0078125, %v424_v12 }
 0x2ae   :  { %v432_v14 = vadd.f32 1e-05, %v429_v13 }
 0x2af   :  { %v428_v15 = vpop.xlane.xlu1 %427  ;;  %v426_v16 = vpop.xlane.xlu0 %425 }
 0x2b0   :  { %2615 = vrsqrt.f32 %v432_v14  ;;  %v431_v17 = vmul.f32 0.0078125, %v428_v15  ;;  %v430_v18 = vmul.f32 0.0078125, %v426_v16 }
 0x2b2   :  { %v434_v19 = vadd.f32 1e-05, %v431_v17  ;;  %v433_v20 = vadd.f32 1e-05, %v430_v18 }
 0x2b4   :  { %2617 = vrsqrt.f32 %v434_v19 }
 0x2b5   :  { %2619 = vrsqrt.f32 %v433_v20 }
 0x2ba   :  { %v2616_v21 = vpop.eup %2615 }
 0x2bb   :  { %v438_v23 = vmul.f32 %v2616_v21, %v417_v51 }
 0x2bd   :  { %v447_v25 = vmul.f32 %v2198_v22, %v438_v23 }
 0x2be   :  { %v2618_v26 = vpop.eup %2617 }
 0x2bf   :  { %v2620_v27 = vpop.eup %2619  ;;  %v456_v28 = vadd.f32 %v2199_v24, %v447_v25  ;;  %v440_v29 = vmul.f32 %v2618_v26, %v419_v53 }
 0x2c0   :  { %v439_v30 = vmul.f32 %v2620_v27, %v418_v56  ;;  %v500_v56 = vrot.slane %v406_v54, %v3133_v33 }
 0x2c1   :  { %v462_v32 = vmul.f32 0.70710677, %v456_v28  ;;  %v449_v34 = vmul.f32 %v2198_v22, %v440_v29  ;;  %v459_v43 = vmul.f32 0.5, %v456_v28 }
 0x2c2   :  { %v448_v35 = vmul.f32 %v2198_v22, %v439_v30 }
 0x2c3   :  { %v458_v36 = vadd.f32 %v2199_v24, %v449_v34  ;;  %2621 = verf.f32 %v462_v32  ;;  %v2541_v34 = vld [vmem:[#allocation8 + $0x40] sm:$0xff]  }
 0x2c4   :  { %v457_v37 = vadd.f32 %v2199_v24, %v448_v35  ;;  %v2542_v35 = vld [vmem:[#allocation8] sm:$0xff]   ;;  %2313 = vmatprep.subr.bf16.mxu1 %v2541_v34 }
 0x2c5   :  { %v464_v39 = vmul.f32 0.70710677, %v458_v36  ;;  %v461_v51 = vmul.f32 0.5, %v458_v36  ;;  %2314 = vmatpush3.bf16.msra.mxu1 %v2542_v35  ;;  %v2543_v36 = vld [vmem:[#allocation8 + $0x48] sm:$0xff]  }
 0x2c6   :  { %v463_v38 = vmul.f32 0.70710677, %v457_v37  ;;  %v460_v44 = vmul.f32 0.5, %v457_v37  ;;  %v2544_v37 = vld [vmem:[#allocation8 + $0x8] sm:$0xff]   ;;  %2315 = vmatprep.subr.bf16.mxu1 %v2543_v36 }
 0x2c8   :  { %2623 = verf.f32 %v463_v38  ;;  %v2545_v38 = vld [vmem:[#allocation8 + $0x50] sm:$0xff]  }
 0x2c9   :  { %2625 = verf.f32 %v464_v39  ;;  %2316 = vmatpush3.bf16.msra.mxu1 %v2544_v37  ;;  %v2546_v39 = vld [vmem:[#allocation8 + $0x10] sm:$0xff]  }
 0x2ca   :  { %2317 = vmatprep.subr.bf16.mxu1 %v2545_v38 }
 0x2cd   :  { %v2622_v40 = vpop.eup %2621  ;;  %2318 = vmatpush3.bf16.msra.mxu1 %v2546_v39 }
 0x2ce   :  { %v468_v41 = vadd.f32 1.0, %v2622_v40  ;;  %v2547_v40 = vld [vmem:[#allocation8 + $0x58] sm:$0xff]  }
 0x2cf   :  { %2319 = vmatprep.subr.bf16.mxu1 %v2547_v40 }
 0x2d0   :  { %v471_v47 = vmul.f32 %v468_v41, %v459_v43  ;;  %v2548_v41 = vld [vmem:[#allocation8 + $0x18] sm:$0xff]   ;;  %v2550_v43 = vld [vmem:[#allocation8 + $0x20] sm:$0xff]  }
 0x2d1   :  { %2320 = vmatpush3.bf16.msra.mxu1 %v2548_v41 }
 0x2d2   :  { %v2624_v42 = vpop.eup %2623 }
 0x2d3   :  { %v469_v45 = vadd.f32 1.0, %v2624_v42  ;;  %v2626_v46 = vpop.eup %2625  ;;  %v2549_v42 = vld [vmem:[#allocation8 + $0x60] sm:$0xff]  }
 0x2d4   :  { %v470_v50 = vadd.f32 1.0, %v2626_v46  ;;  %2321 = vmatprep.subr.bf16.mxu1 %v2549_v42  ;;  %v2553_v46 = vld [vmem:[#allocation8 + $0x70] sm:$0xff]  }
 0x2d5   :  { %v472_v48 = vmul.f32 %v469_v45, %v460_v44  ;;  %v2551_v44 = vld [vmem:[#allocation8 + $0x68] sm:$0xff]   ;;  %2322 = vmatpush3.bf16.msra.mxu1 %v2550_v43 }
 0x2d6   :  { %v473_v52 = vmul.f32 %v470_v50, %v461_v51  ;;  %v2552_v45 = vld [vmem:[#allocation8 + $0x28] sm:$0xff]   ;;  %2323 = vmatprep.subr.bf16.mxu1 %v2551_v44 }
 0x2d7   :  { %v474_v49 = vpack.c.bf16 %v472_v48, %v471_v47  ;;  %v2554_v47 = vld [vmem:[#allocation8 + $0x30] sm:$0xff]   ;;  %v2555_v48 = vld [vmem:[#allocation8 + $0x78] sm:$0xff]  }
 0x2d8   :  { %v475_v53 = vpack.c.bf16 %v473_v52, %v473_v52 }
 0x2d9   :  { %616 = vmatmul.mubr.bf16.vlgmr.msra.gmra.mrb[4].mxu0 %v474_v49  ;;  %2324 = vmatpush3.bf16.msra.mxu1 %v2552_v45  ;;  %v2556_v49 = vld [vmem:[#allocation8 + $0x38] sm:$0xff]  }
 0x2da   :  { %625 = vmatprep.mubr.bf16.mxu0 %v2949_v1  ;;  %2325 = vmatprep.subr.bf16.mxu1 %v2553_v46 }
 0x2dd   :  { %2326 = vmatpush3.bf16.msra.mxu1 %v2554_v47 }
 0x2de   :  { %2327 = vmatprep.subr.bf16.mxu1 %v2555_v48 }
 0x2e1   :  { %626 = vmatmul.mubr.bf16.gmra.mrb[8].mxu0 %v475_v53  ;;  %2328 = vmatpush3.bf16.msra.mxu1 %v2556_v49 }
 0x3ac   :  { %v617_v57 = vpop.f32.mrb[4].mxu0 }
 0x3ad   :  { %v618_v58 = vadd.f32 %v617_v57, %v496_v55  ;;  %v619_v59 = vpop.f32.mrb[5].mxu0 }
 0x3ae   :  { %v620_v60 = vadd.f32 %v619_v59, %v500_v56  ;;  %v621_v61 = vpop.f32.mrb[6].mxu0 }
 0x3af   :  { %v622_v62 = vadd.f32 %v621_v61, %v496_v55  ;;  %v623_v63 = vpop.f32.mrb[7].mxu0 }
 0x3b0   :  { %v624_v0 = vadd.f32 %v623_v63, %v500_v56  ;;  %v637_v2 = vadd.f32 %v620_v60, %v618_v58 }
 0x3b2   :  { %638 = vadd.xlane.f32.xlu0 %v637_v2  ;;  %v640_v3 = vadd.f32 %v624_v0, %v622_v62 }
 0x3b4   :  { %v627_v4 = vpop.f32.mrb[8].mxu0  ;;  %641 = vadd.xlane.f32.xlu1 %v640_v3 }
 0x3b5   :  { %v628_v5 = vadd.f32 %v627_v4, %v496_v55  ;;  %v629_v6 = vpop.f32.mrb[9].mxu0 }
 0x3b6   :  { %v630_v7 = vadd.f32 %v629_v6, %v500_v56  ;;  %v631_v8 = vpop.f32.mrb[10].mxu0 }
 0x3b7   :  { %v632_v9 = vpop.f32.mrb[11].mxu0 }
 0x3b8   :  { %v643_v10 = vadd.f32 %v630_v7, %v628_v5 }
 0x3ba   :  { %644 = vadd.xlane.f32.xlu0 %v643_v10 }
 0x43f   :  { %v639_v11 = vpop.xlane.xlu0 %638 }
 0x440   :  { %v647_v12 = vmul.f32 0.00390625, %v639_v11 }
 0x441   :  { %v642_v13 = vpop.xlane.xlu1 %641 }
 0x442   :  { %v3188_v14 = vsub.f32 %v618_v58, %v647_v12  ;;  %v3190_v15 = vsub.f32 %v620_v60, %v647_v12  ;;  %v648_v16 = vmul.f32 0.00390625, %v642_v13  ;;  %v634_v58 = vld [vmem:[#allocation5 + $0x7] sm:$0x3]  ;;  %v635_v60 = vld [vmem:[#allocation5 + $0x9] sm:$0x3] }
 0x443   :  { %v690_v61 = vrot.slane %v634_v58, %v3131_v31  ;;  %v707_v3 = vrot.slane %v635_v60, %v3131_v31  ;;  %v711_v4 = vrot.slane %v635_v60, %v3133_v33 }
 0x444   :  { %v3192_v17 = vsub.f32 %v622_v62, %v648_v16  ;;  %v3194_v18 = vsub.f32 %v624_v0, %v648_v16  ;;  %v656_v19 = vmul.f32 %v3188_v14, %v3188_v14  ;;  %v657_v20 = vmul.f32 %v3190_v15, %v3190_v15 }
 0x445   :  { %v694_v62 = vrot.slane %v634_v58, %v3133_v33 }
 0x446   :  { %v662_v21 = vadd.f32 %v657_v20, %v656_v19  ;;  %v658_v22 = vmul.f32 %v3192_v17, %v3192_v17  ;;  %v659_v23 = vmul.f32 %v3194_v18, %v3194_v18 }
 0x447   :  { %v645_v24 = vpop.xlane.xlu0 %644 }
 0x448   :  { %v649_v25 = vmul.f32 0.00390625, %v645_v24  ;;  %663 = vadd.xlane.f32.xlu1 %v662_v21  ;;  %v665_v26 = vadd.f32 %v659_v23, %v658_v22 }
 0x44a   :  { %v3204_v27 = vsub.f32 %v628_v5, %v649_v25  ;;  %v3206_v28 = vsub.f32 %v630_v7, %v649_v25  ;;  %666 = vadd.xlane.f32.xlu0 %v665_v26 }
 0x44c   :  { %v660_v29 = vmul.f32 %v3204_v27, %v3204_v27  ;;  %v661_v30 = vmul.f32 %v3206_v28, %v3206_v28 }
 0x44e   :  { %v668_v32 = vadd.f32 %v661_v30, %v660_v29 }
 0x450   :  { %669 = vadd.xlane.f32.xlu1 %v668_v32 }
 0x4d5   :  { %v664_v50 = vpop.xlane.xlu1 %663 }
 0x4d6   :  { %v671_v51 = vmul.f32 0.00390625, %v664_v50 }
 0x4d7   :  { %v667_v52 = vpop.xlane.xlu0 %666 }
 0x4d8   :  { %v674_v53 = vadd.f32 1e-05, %v671_v51  ;;  %v672_v54 = vmul.f32 0.00390625, %v667_v52 }
 0x4da   :  { %2627 = vrsqrt.f32 %v674_v53  ;;  %v675_v55 = vadd.f32 1e-05, %v672_v54 }
 0x4dc   :  { %2629 = vrsqrt.f32 %v675_v55 }
 0x4dd   :  { %v670_v56 = vpop.xlane.xlu1 %669 }
 0x4de   :  { %v673_v57 = vmul.f32 0.00390625, %v670_v56 }
 0x4e0   :  { %v676_v59 = vadd.f32 1e-05, %v673_v57 }
 0x4e2   :  { %2631 = vrsqrt.f32 %v676_v59 }
 0x4e4   :  { %v2628_v63 = vpop.eup %2627 }
 0x4e5   :  { %v680_v0 = vmul.f32 %v2628_v63, %v3188_v14  ;;  %v681_v2 = vmul.f32 %v2628_v63, %v3190_v15 }
 0x4e6   :  { %v2630_v5 = vpop.eup %2629 }
 0x4e7   :  { %v697_v6 = vmul.f32 %v690_v61, %v680_v0  ;;  %v682_v7 = vmul.f32 %v2630_v5, %v3192_v17  ;;  %v683_v8 = vmul.f32 %v2630_v5, %v3194_v18  ;;  %v698_v9 = vmul.f32 %v694_v62, %v681_v2 }
 0x4e9   :  { %v699_v10 = vmul.f32 %v690_v61, %v682_v7  ;;  %v700_v11 = vmul.f32 %v694_v62, %v683_v8  ;;  %v715_v12 = vadd.f32 %v711_v4, %v698_v9  ;;  %v714_v13 = vadd.f32 %v707_v3, %v697_v6 }
 0x4eb   :  { %v717_v16 = vadd.f32 %v711_v4, %v700_v11  ;;  %v727_v19 = vmul.f32 0.70710677, %v715_v12  ;;  %v716_v14 = vadd.f32 %v707_v3, %v699_v10  ;;  %v726_v15 = vmul.f32 0.70710677, %v714_v13 }
 0x4ec   :  { %v2632_v20 = vpop.eup %2631  ;;  %v721_v39 = vmul.f32 0.5, %v715_v12 }
 0x4ed   :  { %v729_v21 = vmul.f32 0.70710677, %v717_v16  ;;  %2633 = verf.f32 %v727_v19  ;;  %v728_v22 = vmul.f32 0.70710677, %v716_v14  ;;  %v685_v23 = vmul.f32 %v2632_v20, %v3206_v28 }
 0x4ee   :  { %2635 = verf.f32 %v726_v15  ;;  %v684_v17 = vmul.f32 %v2632_v20, %v3204_v27  ;;  %v723_v28 = vmul.f32 0.5, %v717_v16  ;;  %v720_v27 = vmul.f32 0.5, %v714_v13 }
 0x4ef   :  { %2637 = verf.f32 %v729_v21  ;;  %v702_v18 = vmul.f32 %v694_v62, %v685_v23  ;;  %v722_v41 = vmul.f32 0.5, %v716_v14 }
 0x4f0   :  { %2639 = verf.f32 %v728_v22  ;;  %v701_v24 = vmul.f32 %v690_v61, %v684_v17  ;;  %v2216_v61 = vld [vmem:[#allocation5 + $0xb] ss:$0 sm:$0xff] }
 0x4f1   :  { %v719_v25 = vadd.f32 %v711_v4, %v702_v18  ;;  %v2557_v18 = vld [vmem:[%s3340_s5] sm:$0xff]  }
 0x4f2   :  { %v718_v26 = vadd.f32 %v707_v3, %v701_v24  ;;  %2415 = vmatprep.subr.bf16.mxu0 %v2557_v18  ;;  %v2558_v24 = vld [vmem:[%s3340_s5 + $0x8] sm:$0xff]  }
 0x4f3   :  { %v731_v29 = vmul.f32 0.70710677, %v719_v25  ;;  %v725_v51 = vmul.f32 0.5, %v719_v25  ;;  %2416 = vmatpush3.bf16.msra.mxu0 %v2557_v18  ;;  %v2559_v25 = vld [vmem:[%s3340_s5 + $0x10] sm:$0xff]  }
 0x4f4   :  { %v730_v30 = vmul.f32 0.70710677, %v718_v26  ;;  %v724_v53 = vmul.f32 0.5, %v718_v26  ;;  %2417 = vmatprep.subr.bf16.mxu0 %v2558_v24  ;;  %v2560_v26 = vld [vmem:[%s3340_s5 + $0x18] sm:$0xff]  }
 0x4f5   :  { %2641 = verf.f32 %v731_v29  ;;  %v2561_v29 = vld [vmem:[%s3340_s5 + $0x20] sm:$0xff]  }
 0x4f6   :  { %2643 = verf.f32 %v730_v30  ;;  %v2562_v30 = vld [vmem:[%s3340_s5 + $0x28] sm:$0xff]  }
 0x4f7   :  { %v2634_v32 = vpop.eup %2633  ;;  %2418 = vmatpush3.bf16.msra.mxu0 %v2558_v24 }
 0x4f8   :  { %v2636_v34 = vpop.eup %2635  ;;  %v739_v35 = vadd.f32 1.0, %v2634_v32  ;;  %2419 = vmatprep.subr.bf16.mxu0 %v2559_v25  ;;  %v2563_v32 = vld [vmem:[%s3340_s5 + $0x30] sm:$0xff]  }
 0x4f9   :  { %v2638_v36 = vpop.eup %2637  ;;  %v738_v37 = vadd.f32 1.0, %v2636_v34  ;;  %v2564_v34 = vld [vmem:[%s3340_s5 + $0x38] sm:$0xff]  }
 0x4fa   :  { %v2640_v38 = vpop.eup %2639  ;;  %v741_v40 = vadd.f32 1.0, %v2638_v36  ;;  %v745_v43 = vmul.f32 %v739_v35, %v721_v39 }
 0x4fb   :  { %v740_v42 = vadd.f32 1.0, %v2640_v38  ;;  %v744_v45 = vmul.f32 %v738_v37, %v720_v27  ;;  %2420 = vmatpush3.bf16.msra.mxu0 %v2559_v25 }
 0x4fc   :  { %v747_v44 = vmul.f32 %v741_v40, %v723_v28  ;;  %2421 = vmatprep.subr.bf16.mxu0 %v2560_v26 }
 0x4fd   :  { %v746_v46 = vmul.f32 %v740_v42, %v722_v41 }
 0x4fe   :  { %v751_v47 = vpack.c.bf16 %v747_v44, %v745_v43  ;;  %v2233_v43 = vld [vmem:[#allocation5 + $0xc] ss:$0 sm:$0xff] }
 0x4ff   :  { %v750_v48 = vpack.c.bf16 %v746_v46, %v744_v45  ;;  %v2642_v49 = vpop.eup %2641  ;;  %2422 = vmatpush3.bf16.msra.mxu0 %v2560_v26  ;;  %v2234_v46 = vld [vmem:[#allocation5 + $0xd] ss:$0 sm:$0xff] }
 0x500   :  { %920 = vmatprep.mubr.bf16.mxu1 %v751_v47  ;;  %v2644_v50 = vpop.eup %2643  ;;  %v743_v52 = vadd.f32 1.0, %v2642_v49  ;;  %2423 = vmatprep.subr.bf16.mxu0 %v2561_v29 }
 0x501   :  { %921 = vmatmul.mubr.bf16.vlgmr.msra.gmra.mrb[4].mxu1 %v750_v48  ;;  %v742_v54 = vadd.f32 1.0, %v2644_v50 }
 0x502   :  { %v749_v55 = vmul.f32 %v743_v52, %v725_v51 }
 0x503   :  { %v748_v56 = vmul.f32 %v742_v54, %v724_v53  ;;  %2424 = vmatpush3.bf16.msra.mxu0 %v2561_v29 }
 0x504   :  { %v753_v57 = vpack.c.bf16 %v749_v55, %v749_v55  ;;  %2425 = vmatprep.subr.bf16.mxu0 %v2562_v30 }
 0x505   :  { %v752_v58 = vpack.c.bf16 %v748_v56, %v748_v56 }
 0x506   :  { %928 = vmatprep.mubr.bf16.mxu1 %v753_v57 }
 0x507   :  { %2426 = vmatpush3.bf16.msra.mxu0 %v2562_v30 }
 0x508   :  { %2427 = vmatprep.subr.bf16.mxu0 %v2563_v32 }
 0x509   :  { %929 = vmatmul.mubr.bf16.gmra.mrb[8].mxu1 %v752_v58 }
 0x50b   :  { %2428 = vmatpush3.bf16.msra.mxu0 %v2563_v32 }
 0x50c   :  { %2429 = vmatprep.subr.bf16.mxu0 %v2564_v34 }
 0x50f   :  { %2430 = vmatpush3.bf16.msra.mxu0 %v2564_v34 }
 0x5d4   :  { %v2329_v59 = vpop.f32.mrb[4].mxu1 }
 0x5d5   :  { %v2330_v60 = vpop.f32.mrb[5].mxu1 }
 0x5d6   :  { %v2331_v62 = vadd.f32 %v2330_v60, %v2329_v59  ;;  %v2332_v63 = vpop.f32.mrb[6].mxu1 }
 0x5d7   :  { %v2333_v0 = vpop.f32.mrb[7].mxu1 }
 0x5d8   :  { %v2334_v2 = vadd.f32 %v2333_v0, %v2332_v63  ;;  %v923_v3 = vadd.f32 %v2331_v62, %v2216_v61 }
 0x5da   :  { %939 = vadd.xlane.f32.xlu0 %v923_v3  ;;  %v926_v4 = vadd.f32 %v2334_v2, %v2216_v61 }
 0x5dc   :  { %v2335_v5 = vpop.f32.mrb[8].mxu1  ;;  %941 = vadd.xlane.f32.xlu1 %v926_v4 }
 0x5dd   :  { %v2336_v6 = vpop.f32.mrb[9].mxu1 }
 0x5de   :  { %v2337_v7 = vadd.f32 %v2336_v6, %v2335_v5  ;;  %v2338_v8 = vpop.f32.mrb[10].mxu1 }
 0x5df   :  { %v2339_v9 = vpop.f32.mrb[11].mxu1 }
 0x5e0   :  { %v931_v10 = vadd.f32 %v2337_v7, %v2216_v61 }
 0x5e2   :  { %943 = vadd.xlane.f32.xlu0 %v931_v10 }
 0x667   :  { %v940_v11 = vpop.xlane.xlu0 %939 }
 0x668   :  { %v945_v12 = vmul.f32 0.0078125, %v940_v11 }
 0x669   :  { %v942_v13 = vpop.xlane.xlu1 %941 }
 0x66a   :  { %v948_v16 = vsub.f32 %v923_v3, %v945_v12  ;;  %v946_v19 = vmul.f32 0.0078125, %v942_v13 }
 0x66c   :  { %v949_v14 = vsub.f32 %v926_v4, %v946_v19  ;;  %v951_v20 = vmul.f32 %v948_v16, %v948_v16 }
 0x66e   :  { %954 = vadd.xlane.f32.xlu1 %v951_v20  ;;  %v952_v15 = vmul.f32 %v949_v14, %v949_v14 }
 0x66f   :  { %v944_v21 = vpop.xlane.xlu0 %943 }
 0x670   :  { %v947_v22 = vmul.f32 0.0078125, %v944_v21  ;;  %956 = vadd.xlane.f32.xlu0 %v952_v15 }
 0x672   :  { %v950_v23 = vsub.f32 %v931_v10, %v947_v22  ;;  %v2235_v10 = vld [vmem:[#allocation5 + $0xe] ss:$0 sm:$0xff] }
 0x674   :  { %v953_v17 = vmul.f32 %v950_v23, %v950_v23 }
 0x676   :  { %958 = vadd.xlane.f32.xlu1 %v953_v17 }
 0x6fb   :  { %v955_v35 = vpop.xlane.xlu1 %954 }
 0x6fc   :  { %v960_v36 = vmul.f32 0.0078125, %v955_v35 }
 0x6fd   :  { %v957_v37 = vpop.xlane.xlu0 %956 }
 0x6fe   :  { %v963_v38 = vadd.f32 1e-05, %v960_v36  ;;  %v961_v39 = vmul.f32 0.0078125, %v957_v37 }
 0x700   :  { %2645 = vrsqrt.f32 %v963_v38  ;;  %v964_v28 = vadd.f32 1e-05, %v961_v39 }
 0x702   :  { %2647 = vrsqrt.f32 %v964_v28  ;;  %v2565_v28 = vld [vmem:[%s3341_s6] sm:$0xff]  }
 0x703   :  { %v959_v40 = vpop.xlane.xlu1 %958  ;;  %2435 = vmatprep.subr.bf16.mxu1 %v2565_v28 }
 0x704   :  { %v962_v27 = vmul.f32 0.0078125, %v959_v40  ;;  %v2566_v40 = vld [vmem:[%s3341_s6 + $0x8] sm:$0xff]   ;;  %2436 = vmatpush3.bf16.msra.mxu1 %v2565_v28 }
 0x705   :  { %2437 = vmatprep.subr.bf16.mxu1 %v2566_v40 }
 0x706   :  { %v965_v41 = vadd.f32 1e-05, %v962_v27  ;;  %v2567_v27 = vld [vmem:[%s3341_s6 + $0x10] sm:$0xff]  }
 0x708   :  { %2649 = vrsqrt.f32 %v965_v41  ;;  %2438 = vmatpush3.bf16.msra.mxu1 %v2566_v40  ;;  %v2568_v41 = vld [vmem:[%s3341_s6 + $0x18] sm:$0xff]   ;;  %s2950_s6 = smov [#allocation16]  }
 0x709   :  { %2439 = vmatprep.subr.bf16.mxu1 %v2567_v27  ;;  %s2158_s20 = sshll.u32 %s2950_s6, 4  ;;  %s2159_s20 = int_to_ptr.vmem [resolvable:$true] %s2158_s20 }
 0x70a   :  { %v2646_v42 = vpop.eup %2645  ;;  %s2899_s17 = scalar_lea.vmem %s2159_s20, 384  ;;  %p2904_p9 = scmp.lt.s32.totalorder %s2159_s20, %s2159_s20 }
 0x70b   :  { %v969_v44 = vmul.f32 %v2646_v42, %v948_v16  ;;  %p2900_p8 = scmp.ne.s32.totalorder %s2159_s20, %s2899_s17  ;;  %p2905_p10 = scmp.lt.s32.totalorder %s2899_s17, %s2899_s17 }
 0x70c   :  { %v2648_v45 = vpop.eup %2647  ;;  %2440 = vmatpush3.bf16.msra.mxu1 %v2567_v27 }
 0x70d   :  { %v970_v47 = vmul.f32 %v2648_v45, %v949_v14  ;;  %v978_v48 = vmul.f32 %v2233_v43, %v969_v44  ;;  %2441 = vmatprep.subr.bf16.mxu1 %v2568_v41  ;;  %p2906_p11 = por %p2905_p10, %p2904_p9 }
 0x70f   :  { %v979_v49 = vmul.f32 %v2233_v43, %v970_v47  ;;  %v987_v50 = vadd.f32 %v2234_v46, %v978_v48  ;;  %p2907_p12 = pnand %p2906_p11, %p2900_p8 }
 0x710   :  { %2442 = vmatpush3.bf16.msra.mxu1 %v2568_v41 }
 0x711   :  { %v988_v51 = vadd.f32 %v2234_v46, %v979_v49  ;;  %v993_v52 = vmul.f32 0.70710677, %v987_v50  ;;  %v990_v62 = vmul.f32 0.5, %v987_v50 }
 0x712   :  { %v2650_v53 = vpop.eup %2649 }
 0x713   :  { %v971_v54 = vmul.f32 %v2650_v53, %v950_v23  ;;  %v994_v55 = vmul.f32 0.70710677, %v988_v51  ;;  %2651 = verf.f32 %v993_v52  ;;  %v991_v63 = vmul.f32 0.5, %v988_v51  ;;  %v2244_v52 = vld [vmem:[#allocation5 + $0xf] ss:$0 sm:$0xff] }
 0x715   :  { %v980_v56 = vmul.f32 %v2233_v43, %v971_v54  ;;  %2653 = verf.f32 %v994_v55  ;;  %v2245_v55 = vld [vmem:[#allocation5 + $0x10] ss:$0 sm:$0xff] }
 0x717   :  { %v989_v57 = vadd.f32 %v2234_v46, %v980_v56 }
 0x719   :  { %v995_v58 = vmul.f32 0.70710677, %v989_v57  ;;  %v992_v6 = vmul.f32 0.5, %v989_v57 }
 0x71b   :  { %2655 = verf.f32 %v995_v58 }
 0x71d   :  { %v2652_v59 = vpop.eup %2651 }
 0x71e   :  { %v999_v60 = vadd.f32 1.0, %v2652_v59 }
 0x71f   :  { %v2654_v61 = vpop.eup %2653 }
 0x720   :  { %v1000_v0 = vadd.f32 1.0, %v2654_v61  ;;  %v1002_v2 = vmul.f32 %v999_v60, %v990_v62 }
 0x722   :  { %v1003_v3 = vmul.f32 %v1000_v0, %v991_v63 }
 0x724   :  { %v1005_v4 = vpack.c.bf16 %v1003_v3, %v1002_v2 }
 0x725   :  { %v2656_v5 = vpop.eup %2655 }
 0x726   :  { %2431 = vmatprep.mubr.bf16.mxu0 %v1005_v4  ;;  %v1001_v7 = vadd.f32 1.0, %v2656_v5 }
 0x728   :  { %v1004_v8 = vmul.f32 %v1001_v7, %v992_v6 }
 0x72a   :  { %v1006_v9 = vpack.c.bf16 %v1004_v8, %v1004_v8 }
 0x72c   :  { %2432 = vmatmul.mubr.bf16.vlgmr.msra.gmra.mrb[12].mxu0 %v1006_v9 }
 0x72d   :  { %1830 = vmatprep.mubr.bf16.mxu0 %v2949_v1 }
 0x7ff   :  { %v2433_v11 = vpop.f32.mrb[12].mxu0 }
 0x800   :  { %v1111_v12 = vpop.f32.mrb[13].mxu0  ;;  %v1120_v14 = vadd.f32 %v2433_v11, %v2235_v10 }
 0x801   :  { %v1112_v13 = vadd.f32 %v2235_v10, %v1111_v12  ;;  %v2434_v16 = vpop.f32.mrb[14].mxu0 }
 0x802   :  { %v1114_v19 = vpop.f32.mrb[15].mxu0  ;;  %v1135_v22 = vsel %vm1128_vm1, %v1120_v14, 0.0 }
 0x803   :  { %v1115_v20 = vadd.f32 %v2235_v10, %v1114_v19  ;;  %v1129_v15 = vsel %vm1128_vm1, %v1112_v13, 0.0 }
 0x804   :  { %1130 = vadd.xlane.f32.xlu0 %v1129_v15 }
 0x805   :  { %v1132_v21 = vsel %vm1128_vm1, %v1115_v20, 0.0 }
 0x806   :  { %1133 = vadd.xlane.f32.xlu1 %v1132_v21  ;;  %v2246_v21 = vld [vmem:[#allocation5 + $0x11] ss:$0 sm:$0xff] }
 0x808   :  { %1136 = vadd.xlane.f32.xlu0 %v1135_v22 }
 0x891   :  { %v1131_v23 = vpop.xlane.xlu0 %1130 }
 0x892   :  { %v1139_v17 = vmul.f32 0.015625, %v1131_v23 }
 0x893   :  { %v1134_v18 = vpop.xlane.xlu1 %1133 }
 0x894   :  { %v1142_v24 = vsub.f32 %v1112_v13, %v1139_v17  ;;  %v1140_v25 = vmul.f32 0.015625, %v1134_v18 }
 0x895   :  { %v1137_v26 = vpop.xlane.xlu0 %1136 }
 0x896   :  { %v1143_v29 = vsub.f32 %v1115_v20, %v1140_v25  ;;  %v1141_v30 = vmul.f32 0.015625, %v1137_v26  ;;  %v1145_v32 = vmul.f32 %v1142_v24, %v1142_v24 }
 0x898   :  { %v1144_v34 = vsub.f32 %v1120_v14, %v1141_v30  ;;  %v1148_v35 = vsel %vm1128_vm1, %v1145_v32, 0.0  ;;  %v1146_v36 = vmul.f32 %v1143_v29, %v1143_v29 }
 0x899   :  { %1149 = vadd.xlane.f32.xlu1 %v1148_v35 }
 0x89a   :  { %v1151_v37 = vsel %vm1128_vm1, %v1146_v36, 0.0  ;;  %v1147_v38 = vmul.f32 %v1144_v34, %v1144_v34 }
 0x89b   :  { %1152 = vadd.xlane.f32.xlu0 %v1151_v37 }
 0x89c   :  { %v1154_v39 = vsel %vm1128_vm1, %v1147_v38, 0.0 }
 0x89d   :  { %1155 = vadd.xlane.f32.xlu1 %v1154_v39 }
 0x926   :  { %v1150_v42 = vpop.xlane.xlu1 %1149 }
 0x927   :  { %v1157_v43 = vmul.f32 0.015625, %v1150_v42 }
 0x928   :  { %v1153_v44 = vpop.xlane.xlu0 %1152 }
 0x929   :  { %v1160_v45 = vadd.f32 1e-05, %v1157_v43  ;;  %v1158_v46 = vmul.f32 0.015625, %v1153_v44 }
 0x92a   :  { %v1156_v47 = vpop.xlane.xlu1 %1155 }
 0x92b   :  { %2657 = vrsqrt.f32 %v1160_v45  ;;  %v1161_v48 = vadd.f32 1e-05, %v1158_v46  ;;  %v1159_v49 = vmul.f32 0.015625, %v1156_v47  ;;  %v2569_v47 = vld [vmem:[#allocation10] sm:$0xff]  }
 0x92c   :  { %2447 = vmatprep.subr.bf16.mxu1 %v2569_v47 }
 0x92d   :  { %2659 = vrsqrt.f32 %v1161_v48  ;;  %v1162_v50 = vadd.f32 1e-05, %v1159_v49  ;;  %v2570_v48 = vld [vmem:[#allocation10 + $0x8] sm:$0xff]  }
 0x92f   :  { %2661 = vrsqrt.f32 %v1162_v50 }
 0x935   :  { %v2658_v51 = vpop.eup %2657 }
 0x936   :  { %v1166_v53 = vmul.f32 %v2658_v51, %v1142_v24 }
 0x937   :  { %v2660_v54 = vpop.eup %2659 }
 0x938   :  { %v1175_v56 = vmul.f32 %v2244_v52, %v1166_v53  ;;  %v1167_v57 = vmul.f32 %v2660_v54, %v1143_v29 }
 0x939   :  { %v2662_v58 = vpop.eup %2661 }
 0x93a   :  { %v1176_v59 = vmul.f32 %v2244_v52, %v1167_v57  ;;  %v1168_v60 = vmul.f32 %v2662_v58, %v1144_v34  ;;  %v1184_v61 = vadd.f32 %v2245_v55, %v1175_v56 }
 0x93c   :  { %v1177_v62 = vmul.f32 %v2244_v52, %v1168_v60  ;;  %v1185_v63 = vadd.f32 %v2245_v55, %v1176_v59  ;;  %v1190_v0 = vmul.f32 0.70710677, %v1184_v61  ;;  %v1187_v8 = vmul.f32 0.5, %v1184_v61  ;;  %v2253_v59 = vld [vmem:[#allocation5 + $0x12] ss:$0 sm:$0xff] }
 0x93e   :  { %v1186_v2 = vadd.f32 %v2245_v55, %v1177_v62  ;;  %v1191_v3 = vmul.f32 0.70710677, %v1185_v63  ;;  %2663 = verf.f32 %v1190_v0  ;;  %v1188_v9 = vmul.f32 0.5, %v1185_v63  ;;  %v2254_v62 = vld [vmem:[#allocation5 + $0x13] ss:$0 sm:$0xff] }
 0x940   :  { %v1192_v4 = vmul.f32 0.70710677, %v1186_v2  ;;  %2665 = verf.f32 %v1191_v3  ;;  %v1189_v16 = vmul.f32 0.5, %v1186_v2 }
 0x942   :  { %2667 = verf.f32 %v1192_v4 }
 0x948   :  { %v2664_v5 = vpop.eup %2663 }
 0x949   :  { %v1196_v6 = vadd.f32 1.0, %v2664_v5 }
 0x94a   :  { %v2666_v7 = vpop.eup %2665 }
 0x94b   :  { %v1197_v10 = vadd.f32 1.0, %v2666_v7  ;;  %v1199_v12 = vmul.f32 %v1196_v6, %v1187_v8 }
 0x94c   :  { %v2668_v11 = vpop.eup %2667 }
 0x94d   :  { %v1200_v13 = vmul.f32 %v1197_v10, %v1188_v9  ;;  %v1198_v19 = vadd.f32 1.0, %v2668_v11 }
 0x94f   :  { %v1202_v14 = vpack.c.bf16 %v1200_v13, %v1199_v12  ;;  %v1201_v20 = vmul.f32 %v1198_v19, %v1189_v16 }
 0x951   :  { %2443 = vmatprep.mubr.msk.bf16.mxu1 %vm1128_vm1, %v1202_v14  ;;  %v1203_v15 = vpack.c.bf16 %v1201_v20, %v1201_v20 }
 0x953   :  { %2444 = vmatmul.mubr.msk.bf16.vlgmr.msra.gmra.mrb[12].mxu1 %vm1128_vm1, %v1203_v15 }
 0x954   :  { %2448 = vmatpush3.bf16.msra.mxu1 %v2569_v47 }
 0x955   :  { %2449 = vmatprep.subr.bf16.mxu1 %v2570_v48 }
 0x958   :  { %2450 = vmatpush3.bf16.msra.mxu1 %v2570_v48 }
 0xa26   :  { %v2445_v22 = vpop.f32.mrb[12].mxu1 }
 0xa27   :  { %v1282_v23 = vpop.f32.mrb[13].mxu1  ;;  %v1291_v25 = vadd.f32 %v2445_v22, %v2246_v21 }
 0xa28   :  { %v1283_v17 = vadd.f32 %v2246_v21, %v1282_v23  ;;  %v2446_v18 = vpop.f32.mrb[14].mxu1 }
 0xa29   :  { %v1285_v24 = vpop.f32.mrb[15].mxu1  ;;  %v1306_v32 = vsel %vm1299_vm2, %v1291_v25, 0.0 }
 0xa2a   :  { %v1286_v26 = vadd.f32 %v2246_v21, %v1285_v24  ;;  %v1300_v29 = vsel %vm1299_vm2, %v1283_v17, 0.0 }
 0xa2b   :  { %1301 = vadd.xlane.f32.xlu0 %v1300_v29 }
 0xa2c   :  { %v1303_v30 = vsel %vm1299_vm2, %v1286_v26, 0.0 }
 0xa2d   :  { %1304 = vadd.xlane.f32.xlu1 %v1303_v30 }
 0xa2f   :  { %1307 = vadd.xlane.f32.xlu0 %v1306_v32 }
 0xab8   :  { %v1302_v34 = vpop.xlane.xlu0 %1301 }
 0xab9   :  { %v1310_v35 = vmul.f32 0.03125, %v1302_v34 }
 0xaba   :  { %v1305_v36 = vpop.xlane.xlu1 %1304 }
 0xabb   :  { %v1313_v37 = vsub.f32 %v1283_v17, %v1310_v35  ;;  %v1311_v38 = vmul.f32 0.03125, %v1305_v36 }
 0xabc   :  { %v1308_v39 = vpop.xlane.xlu0 %1307 }
 0xabd   :  { %v1314_v28 = vsub.f32 %v1286_v26, %v1311_v38  ;;  %v1312_v40 = vmul.f32 0.03125, %v1308_v39  ;;  %v1316_v27 = vmul.f32 %v1313_v37, %v1313_v37  ;;  %v2255_v26 = vld [vmem:[#allocation5 + $0x14] ss:$0 sm:$0xff] }
 0xabf   :  { %v1315_v41 = vsub.f32 %v1291_v25, %v1312_v40  ;;  %v1319_v42 = vsel %vm1299_vm2, %v1316_v27, 0.0  ;;  %v1317_v43 = vmul.f32 %v1314_v28, %v1314_v28 }
 0xac0   :  { %1320 = vadd.xlane.f32.xlu1 %v1319_v42 }
 0xac1   :  { %v1322_v44 = vsel %vm1299_vm2, %v1317_v43, 0.0  ;;  %v1318_v45 = vmul.f32 %v1315_v41, %v1315_v41 }
 0xac2   :  { %1323 = vadd.xlane.f32.xlu0 %v1322_v44 }
 0xac3   :  { %v1325_v46 = vsel %vm1299_vm2, %v1318_v45, 0.0 }
 0xac4   :  { %1326 = vadd.xlane.f32.xlu1 %v1325_v46 }
 0xb4d   :  { %v1321_v49 = vpop.xlane.xlu1 %1320 }
 0xb4e   :  { %v1328_v50 = vmul.f32 0.03125, %v1321_v49 }
 0xb4f   :  { %v1324_v51 = vpop.xlane.xlu0 %1323 }
 0xb50   :  { %v1331_v52 = vadd.f32 1e-05, %v1328_v50  ;;  %v1329_v53 = vmul.f32 0.03125, %v1324_v51 }
 0xb51   :  { %v1327_v54 = vpop.xlane.xlu1 %1326 }
 0xb52   :  { %2669 = vrsqrt.f32 %v1331_v52  ;;  %v1332_v55 = vadd.f32 1e-05, %v1329_v53  ;;  %v1330_v56 = vmul.f32 0.03125, %v1327_v54  ;;  %v2571_v54 = vld [vmem:[#allocation11] sm:$0xff]  }
 0xb53   :  { %2455 = vmatprep.subr.bf16.mxu1 %v2571_v54 }
 0xb54   :  { %2671 = vrsqrt.f32 %v1332_v55  ;;  %v1333_v57 = vadd.f32 1e-05, %v1330_v56  ;;  %v2572_v55 = vld [vmem:[#allocation11 + $0x8] sm:$0xff]   ;;  %v2573_v56 = vld [vmem:[#allocation11 + $0x10] sm:$0xff]  }
 0xb56   :  { %2673 = vrsqrt.f32 %v1333_v57  ;;  %v2574_v57 = vld [vmem:[#allocation11 + $0x18] sm:$0xff]  }
 0xb5c   :  { %v2670_v58 = vpop.eup %2669 }
 0xb5d   :  { %v1337_v60 = vmul.f32 %v2670_v58, %v1313_v37 }
 0xb5e   :  { %v2672_v61 = vpop.eup %2671 }
 0xb5f   :  { %v1346_v63 = vmul.f32 %v2253_v59, %v1337_v60  ;;  %v1338_v0 = vmul.f32 %v2672_v61, %v1314_v28 }
 0xb60   :  { %v2674_v2 = vpop.eup %2673 }
 0xb61   :  { %v1347_v3 = vmul.f32 %v2253_v59, %v1338_v0  ;;  %v1339_v4 = vmul.f32 %v2674_v2, %v1315_v41  ;;  %v1355_v5 = vadd.f32 %v2254_v62, %v1346_v63 }
 0xb63   :  { %v1348_v6 = vmul.f32 %v2253_v59, %v1339_v4  ;;  %v1356_v7 = vadd.f32 %v2254_v62, %v1347_v3  ;;  %v1361_v8 = vmul.f32 0.70710677, %v1355_v5  ;;  %v1358_v19 = vmul.f32 0.5, %v1355_v5  ;;  %v2260_v5 = vld [vmem:[#allocation5 + $0x15] ss:$0 sm:$0xff] }
 0xb65   :  { %v1362_v9 = vmul.f32 0.70710677, %v1356_v7  ;;  %2675 = verf.f32 %v1361_v8  ;;  %v1357_v10 = vadd.f32 %v2254_v62, %v1348_v6  ;;  %v1359_v14 = vmul.f32 0.5, %v1356_v7  ;;  %v2261_v8 = vld [vmem:[#allocation5 + $0x16] ss:$0 sm:$0xff] }
 0xb67   :  { %2677 = verf.f32 %v1362_v9  ;;  %v1363_v11 = vmul.f32 0.70710677, %v1357_v10  ;;  %v1360_v23 = vmul.f32 0.5, %v1357_v10 }
 0xb69   :  { %2679 = verf.f32 %v1363_v11 }
 0xb6f   :  { %v2676_v12 = vpop.eup %2675 }
 0xb70   :  { %v1367_v13 = vadd.f32 1.0, %v2676_v12 }
 0xb71   :  { %v2678_v16 = vpop.eup %2677 }
 0xb72   :  { %v1368_v20 = vadd.f32 1.0, %v2678_v16  ;;  %v1370_v21 = vmul.f32 %v1367_v13, %v1358_v19 }
 0xb73   :  { %v2680_v15 = vpop.eup %2679 }
 0xb74   :  { %v1371_v22 = vmul.f32 %v1368_v20, %v1359_v14  ;;  %v1369_v17 = vadd.f32 1.0, %v2680_v15 }
 0xb76   :  { %v1373_v18 = vpack.c.bf16 %v1371_v22, %v1370_v21  ;;  %v1372_v24 = vmul.f32 %v1369_v17, %v1360_v23 }
 0xb78   :  { %2451 = vmatprep.mubr.msk.bf16.mxu1 %vm1299_vm2, %v1373_v18  ;;  %v1374_v25 = vpack.c.bf16 %v1372_v24, %v1372_v24 }
 0xb7a   :  { %2452 = vmatmul.mubr.msk.bf16.vlgmr.msra.gmra.mrb[16].mxu1 %vm1299_vm2, %v1374_v25 }
 0xb7b   :  { %2456 = vmatpush3.bf16.msra.mxu1 %v2571_v54 }
 0xb7c   :  { %2457 = vmatprep.subr.bf16.mxu1 %v2572_v55 }
 0xb7f   :  { %2458 = vmatpush3.bf16.msra.mxu1 %v2572_v55 }
 0xb80   :  { %2459 = vmatprep.subr.bf16.mxu1 %v2573_v56 }
 0xb83   :  { %2460 = vmatpush3.bf16.msra.mxu1 %v2573_v56 }
 0xb84   :  { %2461 = vmatprep.subr.bf16.mxu1 %v2574_v57 }
 0xb87   :  { %2462 = vmatpush3.bf16.msra.mxu1 %v2574_v57  ;;  %v2577_v57 = vld [vmem:[#allocation13 + $0x4] ss:$8 sps:$4 sm:$0xff]  }
 0xb88   :  { %1798 = vmatprep.subr.bf16.mxu0 %v2577_v57 }
 0xc4d   :  { %v2453_v29 = vpop.f32.mrb[16].mxu1 }
 0xc4e   :  { %v1437_v30 = vpop.f32.mrb[17].mxu1  ;;  %v1446_v36 = vadd.f32 %v2453_v29, %v2255_v26 }
 0xc4f   :  { %v1438_v32 = vadd.f32 %v2255_v26, %v1437_v30  ;;  %v2454_v34 = vpop.f32.mrb[18].mxu1 }
 0xc50   :  { %v1440_v35 = vpop.f32.mrb[19].mxu1  ;;  %v1460_v28 = vsel %vm1128_vm1, %v1446_v36, 0.0 }
 0xc51   :  { %v1441_v37 = vadd.f32 %v2255_v26, %v1440_v35  ;;  %v1454_v38 = vsel %vm1128_vm1, %v1438_v32, 0.0 }
 0xc52   :  { %1455 = vadd.xlane.f32.xlu0 %v1454_v38 }
 0xc53   :  { %v1457_v39 = vsel %vm1128_vm1, %v1441_v37, 0.0 }
 0xc54   :  { %1458 = vadd.xlane.f32.xlu1 %v1457_v39  ;;  %v2262_v39 = vld [vmem:[#allocation5 + $0x17] ss:$0 sm:$0xff] }
 0xc56   :  { %1461 = vadd.xlane.f32.xlu0 %v1460_v28 }
 0xcdf   :  { %v1456_v40 = vpop.xlane.xlu0 %1455 }
 0xce0   :  { %v1463_v27 = vmul.f32 0.015625, %v1456_v40 }
 0xce1   :  { %v1459_v41 = vpop.xlane.xlu1 %1458 }
 0xce2   :  { %v1466_v42 = vsub.f32 %v1438_v32, %v1463_v27  ;;  %v1464_v43 = vmul.f32 0.015625, %v1459_v41 }
 0xce3   :  { %v1462_v44 = vpop.xlane.xlu0 %1461 }
 0xce4   :  { %v1467_v45 = vsub.f32 %v1441_v37, %v1464_v43  ;;  %v1465_v46 = vmul.f32 0.015625, %v1462_v44  ;;  %v1469_v47 = vmul.f32 %v1466_v42, %v1466_v42 }
 0xce6   :  { %v1468_v48 = vsub.f32 %v1446_v36, %v1465_v46  ;;  %v1472_v49 = vsel %vm1128_vm1, %v1469_v47, 0.0  ;;  %v1470_v50 = vmul.f32 %v1467_v45, %v1467_v45 }
 0xce7   :  { %1473 = vadd.xlane.f32.xlu1 %v1472_v49 }
 0xce8   :  { %v1475_v51 = vsel %vm1128_vm1, %v1470_v50, 0.0  ;;  %v1471_v52 = vmul.f32 %v1468_v48, %v1468_v48 }
 0xce9   :  { %1476 = vadd.xlane.f32.xlu0 %v1475_v51 }
 0xcea   :  { %v1478_v53 = vsel %vm1128_vm1, %v1471_v52, 0.0 }
 0xceb   :  { %1479 = vadd.xlane.f32.xlu1 %v1478_v53 }
 0xd74   :  { %v1474_v58 = vpop.xlane.xlu1 %1473 }
 0xd75   :  { %v1481_v59 = vmul.f32 0.015625, %v1474_v58  ;;  %v2575_v58 = vld [vmem:[#allocation13] ss:$8 sps:$4 sm:$0xff]  }
 0xd76   :  { %v1477_v60 = vpop.xlane.xlu0 %1476  ;;  %1799 = vmatpush1.bf16.msra.mxu0 %v2575_v58 }
 0xd77   :  { %v1484_v61 = vadd.f32 1e-05, %v1481_v59  ;;  %v1482_v62 = vmul.f32 0.015625, %v1477_v60  ;;  %v2580_v59 = vld [vmem:[#allocation13 + $0x14] ss:$8 sps:$4 sm:$0xff]  }
 0xd78   :  { %v1480_v63 = vpop.xlane.xlu1 %1479  ;;  %v2578_v60 = vld [vmem:[#allocation13 + $0x10] ss:$8 sps:$4 sm:$0xff]   ;;  %1800 = vmatprep.subr.bf16.mxu0 %v2580_v59 }
 0xd79   :  { %2681 = vrsqrt.f32 %v1484_v61  ;;  %v1485_v0 = vadd.f32 1e-05, %v1482_v62  ;;  %v1483_v2 = vmul.f32 0.015625, %v1480_v63  ;;  %v2583_v61 = vld [vmem:[#allocation13 + $0x24] ss:$8 sps:$4 sm:$0xff]  }
 0xd7a   :  { %1801 = vmatpush1.bf16.msra.mxu0 %v2578_v60  ;;  %v2581_v62 = vld [vmem:[#allocation13 + $0x20] ss:$8 sps:$4 sm:$0xff]   ;;  %v2586_v63 = vld [vmem:[#allocation13 + $0x34] ss:$8 sps:$4 sm:$0xff]  }
 0xd7b   :  { %2683 = vrsqrt.f32 %v1485_v0  ;;  %v1486_v3 = vadd.f32 1e-05, %v1483_v2  ;;  %1802 = vmatprep.subr.bf16.mxu0 %v2583_v61  ;;  %v2584_v0 = vld [vmem:[#allocation13 + $0x30] ss:$8 sps:$4 sm:$0xff]   ;;  %v2589_v2 = vld [vmem:[#allocation13 + $0x44] ss:$8 sps:$4 sm:$0xff]  }
 0xd7d   :  { %2685 = vrsqrt.f32 %v1486_v3  ;;  %v2587_v3 = vld [vmem:[#allocation13 + $0x40] ss:$8 sps:$4 sm:$0xff]  }
 0xd7e   :  { %1803 = vmatpush1.bf16.msra.mxu0 %v2581_v62 }
 0xd7f   :  { %1804 = vmatprep.subr.bf16.mxu0 %v2586_v63 }
 0xd82   :  { %1805 = vmatpush1.bf16.msra.mxu0 %v2584_v0 }
 0xd83   :  { %v2682_v4 = vpop.eup %2681  ;;  %1806 = vmatprep.subr.bf16.mxu0 %v2589_v2 }
 0xd84   :  { %v1490_v6 = vmul.f32 %v2682_v4, %v1466_v42  ;;  %v2592_v4 = vld [vmem:[#allocation13 + $0x54] ss:$8 sps:$4 sm:$0xff]  }
 0xd85   :  { %v2684_v7 = vpop.eup %2683 }
 0xd86   :  { %v1499_v9 = vmul.f32 %v2260_v5, %v1490_v6  ;;  %v1491_v10 = vmul.f32 %v2684_v7, %v1467_v45  ;;  %1807 = vmatpush1.bf16.msra.mxu0 %v2587_v3  ;;  %v2595_v6 = vld [vmem:[#allocation13 + $0x64] ss:$8 sps:$4 sm:$0xff]   ;;  %v2593_v7 = vld [vmem:[#allocation13 + $0x60] ss:$8 sps:$4 sm:$0xff]  }
 0xd87   :  { %v2686_v11 = vpop.eup %2685  ;;  %1808 = vmatprep.subr.bf16.mxu0 %v2592_v4 }
 0xd88   :  { %v1500_v12 = vmul.f32 %v2260_v5, %v1491_v10  ;;  %v1492_v13 = vmul.f32 %v2686_v11, %v1468_v48  ;;  %v1508_v16 = vadd.f32 %v2261_v8, %v1499_v9  ;;  %v2596_v9 = vld [vmem:[#allocation13 + $0x70] ss:$8 sps:$4 sm:$0xff]  }
 0xd8a   :  { %v1501_v19 = vmul.f32 %v2260_v5, %v1492_v13  ;;  %v1509_v14 = vadd.f32 %v2261_v8, %v1500_v12  ;;  %v1514_v20 = vmul.f32 0.70710677, %v1508_v16  ;;  %v1511_v24 = vmul.f32 0.5, %v1508_v16  ;;  %v2590_v5 = vld [vmem:[#allocation13 + $0x50] ss:$8 sps:$4 sm:$0xff]  }
 0xd8b   :  { %1809 = vmatpush1.bf16.msra.mxu0 %v2590_v5 }
 0xd8c   :  { %v1515_v15 = vmul.f32 0.70710677, %v1509_v14  ;;  %2687 = verf.f32 %v1514_v20  ;;  %v1510_v21 = vadd.f32 %v2261_v8, %v1501_v19  ;;  %v1512_v25 = vmul.f32 0.5, %v1509_v14  ;;  %1810 = vmatprep.subr.bf16.mxu0 %v2595_v6  ;;  %v2598_v8 = vld [vmem:[#allocation13 + $0x74] ss:$8 sps:$4 sm:$0xff]  }
 0xd8e   :  { %2689 = verf.f32 %v1515_v15  ;;  %v1516_v22 = vmul.f32 0.70710677, %v1510_v21  ;;  %v1513_v34 = vmul.f32 0.5, %v1510_v21 }
 0xd8f   :  { %1811 = vmatpush1.bf16.msra.mxu0 %v2593_v7 }
 0xd90   :  { %2691 = verf.f32 %v1516_v22  ;;  %1812 = vmatprep.subr.bf16.mxu0 %v2598_v8  ;;  %v2269_v22 = vld [vmem:[#allocation5 + $0x18] ss:$0 sm:$0xff] }
 0xd93   :  { %1813 = vmatpush1.bf16.msra.mxu0 %v2596_v9 }
 0xd96   :  { %v2688_v23 = vpop.eup %2687 }
 0xd97   :  { %v1520_v17 = vadd.f32 1.0, %v2688_v23 }
 0xd98   :  { %v2690_v18 = vpop.eup %2689 }
 0xd99   :  { %v1521_v26 = vadd.f32 1.0, %v2690_v18  ;;  %v1523_v30 = vmul.f32 %v1520_v17, %v1511_v24  ;;  %v2270_v18 = vld [vmem:[#allocation5 + $0x19] ss:$0 sm:$0xff] }
 0xd9a   :  { %v2692_v29 = vpop.eup %2691 }
 0xd9b   :  { %v1524_v32 = vmul.f32 %v1521_v26, %v1512_v25  ;;  %v1522_v35 = vadd.f32 1.0, %v2692_v29 }
 0xd9d   :  { %v1526_v36 = vpack.c.bf16 %v1524_v32, %v1523_v30  ;;  %v1525_v37 = vmul.f32 %v1522_v35, %v1513_v34 }
 0xd9f   :  { %2463 = vmatprep.mubr.msk.bf16.mxu1 %vm1128_vm1, %v1526_v36  ;;  %v1527_v38 = vpack.c.bf16 %v1525_v37, %v1525_v37 }
 0xda1   :  { %2464 = vmatmul.mubr.msk.bf16.vlgmr.msra.gmra.mrb[20].mxu1 %vm1128_vm1, %v1527_v38 }
 0xe74   :  { %v2465_v28 = vpop.f32.mrb[20].mxu1 }
 0xe75   :  { %v1606_v40 = vpop.f32.mrb[21].mxu1  ;;  %v1615_v44 = vadd.f32 %v2465_v28, %v2262_v39 }
 0xe76   :  { %v1607_v27 = vadd.f32 %v2262_v39, %v1606_v40  ;;  %v2466_v41 = vpop.f32.mrb[22].mxu1 }
 0xe77   :  { %v1609_v42 = vpop.f32.mrb[23].mxu1 }
 0xe78   :  { %v1610_v43 = vadd.f32 %v2262_v39, %v1609_v42  ;;  %1623 = vadd.xlane.f32.xlu0 %v1607_v27 }
 0xe7a   :  { %1625 = vadd.xlane.f32.xlu1 %v1610_v43 }
 0xe7c   :  { %1627 = vadd.xlane.f32.xlu0 %v1615_v44 }
 0xf05   :  { %v1624_v45 = vpop.xlane.xlu0 %1623 }
 0xf06   :  { %v1629_v46 = vmul.f32 0.0078125, %v1624_v45 }
 0xf07   :  { %v1626_v47 = vpop.xlane.xlu1 %1625 }
 0xf08   :  { %v1632_v48 = vsub.f32 %v1607_v27, %v1629_v46  ;;  %v1630_v49 = vmul.f32 0.0078125, %v1626_v47 }
 0xf09   :  { %v1628_v50 = vpop.xlane.xlu0 %1627 }
 0xf0a   :  { %v1633_v51 = vsub.f32 %v1610_v43, %v1630_v49  ;;  %v1631_v52 = vmul.f32 0.0078125, %v1628_v50  ;;  %v1635_v53 = vmul.f32 %v1632_v48, %v1632_v48 }
 0xf0c   :  { %v1634_v54 = vsub.f32 %v1615_v44, %v1631_v52  ;;  %1638 = vadd.xlane.f32.xlu1 %v1635_v53  ;;  %v1636_v55 = vmul.f32 %v1633_v51, %v1633_v51  ;;  %v1622_v52 = vld [vmem:[#allocation5 + $0x1a] sm:$0x3] }
 0xf0d   :  { %v1711_v53 = vrot.slane %v1622_v52, %v3131_v31 }
 0xf0e   :  { %1640 = vadd.xlane.f32.xlu0 %v1636_v55  ;;  %v1637_v56 = vmul.f32 %v1634_v54, %v1634_v54 }
 0xf10   :  { %1642 = vadd.xlane.f32.xlu1 %v1637_v56 }
 0xf99   :  { %v1639_v10 = vpop.xlane.xlu1 %1638 }
 0xf9a   :  { %v1644_v11 = vmul.f32 0.0078125, %v1639_v10 }
 0xf9b   :  { %v1641_v12 = vpop.xlane.xlu0 %1640 }
 0xf9c   :  { %v1647_v13 = vadd.f32 1e-05, %v1644_v11  ;;  %v1645_v16 = vmul.f32 0.0078125, %v1641_v12 }
 0xf9d   :  { %v1643_v19 = vpop.xlane.xlu1 %1642 }
 0xf9e   :  { %2693 = vrsqrt.f32 %v1647_v13  ;;  %v1648_v14 = vadd.f32 1e-05, %v1645_v16  ;;  %v1646_v20 = vmul.f32 0.0078125, %v1643_v19 }
 0xfa0   :  { %2695 = vrsqrt.f32 %v1648_v14  ;;  %v1649_v15 = vadd.f32 1e-05, %v1646_v20 }
 0xfa2   :  { %2697 = vrsqrt.f32 %v1649_v15 }
 0xfa8   :  { %v2694_v21 = vpop.eup %2693 }
 0xfa9   :  { %v1653_v23 = vmul.f32 %v2694_v21, %v1632_v48 }
 0xfaa   :  { %v2696_v17 = vpop.eup %2695 }
 0xfab   :  { %v1662_v24 = vmul.f32 %v2269_v22, %v1653_v23  ;;  %v1654_v25 = vmul.f32 %v2696_v17, %v1633_v51 }
 0xfac   :  { %v2698_v26 = vpop.eup %2697 }
 0xfad   :  { %v1663_v29 = vmul.f32 %v2269_v22, %v1654_v25  ;;  %v1671_v30 = vadd.f32 %v2270_v18, %v1662_v24  ;;  %v1655_v32 = vmul.f32 %v2698_v26, %v1634_v54  ;;  %v1715_v54 = vrot.slane %v1622_v52, %v3133_v33 }
 0xfaf   :  { %v1672_v34 = vadd.f32 %v2270_v18, %v1663_v29  ;;  %v1677_v35 = vmul.f32 0.70710677, %v1671_v30  ;;  %v1664_v36 = vmul.f32 %v2269_v22, %v1655_v32  ;;  %v1674_v41 = vmul.f32 0.5, %v1671_v30  ;;  %v2599_v32 = vld [vmem:[#allocation14 + $0x40] sm:$0xff]  }
 0xfb0   :  { %2367 = vmatprep.subr.bf16.mxu1 %v2599_v32 }
 0xfb1   :  { %v1678_v37 = vmul.f32 0.70710677, %v1672_v34  ;;  %2699 = verf.f32 %v1677_v35  ;;  %v1673_v38 = vadd.f32 %v2270_v18, %v1664_v36  ;;  %v1675_v42 = vmul.f32 0.5, %v1672_v34  ;;  %v2600_v34 = vld [vmem:[#allocation14] sm:$0xff]   ;;  %v2601_v35 = vld [vmem:[#allocation14 + $0x48] sm:$0xff]  }
 0xfb2   :  { %2368 = vmatpush3.bf16.msra.mxu1 %v2600_v34  ;;  %v2602_v36 = vld [vmem:[#allocation14 + $0x8] sm:$0xff]  }
 0xfb3   :  { %2701 = verf.f32 %v1678_v37  ;;  %v1679_v39 = vmul.f32 0.70710677, %v1673_v38  ;;  %v1676_v49 = vmul.f32 0.5, %v1673_v38  ;;  %2369 = vmatprep.subr.bf16.mxu1 %v2601_v35  ;;  %v2603_v37 = vld [vmem:[#allocation14 + $0x50] sm:$0xff]  }
 0xfb4   :  { %v2604_v38 = vld [vmem:[#allocation14 + $0x10] sm:$0xff]  }
 0xfb5   :  { %2703 = verf.f32 %v1679_v39  ;;  %v2605_v39 = vld [vmem:[#allocation14 + $0x58] sm:$0xff]  }
 0xfb6   :  { %2370 = vmatpush3.bf16.msra.mxu1 %v2602_v36 }
 0xfb7   :  { %2371 = vmatprep.subr.bf16.mxu1 %v2603_v37 }
 0xfba   :  { %2372 = vmatpush3.bf16.msra.mxu1 %v2604_v38 }
 0xfbb   :  { %v2700_v28 = vpop.eup %2699  ;;  %2373 = vmatprep.subr.bf16.mxu1 %v2605_v39 }
 0xfbc   :  { %v1683_v40 = vadd.f32 1.0, %v2700_v28  ;;  %v2606_v28 = vld [vmem:[#allocation14 + $0x18] sm:$0xff]  }
 0xfbd   :  { %v2702_v27 = vpop.eup %2701 }
 0xfbe   :  { %v1684_v43 = vadd.f32 1.0, %v2702_v27  ;;  %v1686_v45 = vmul.f32 %v1683_v40, %v1674_v41  ;;  %v2607_v40 = vld [vmem:[#allocation14 + $0x60] sm:$0xff]   ;;  %2374 = vmatpush3.bf16.msra.mxu1 %v2606_v28  ;;  %v2609_v41 = vld [vmem:[#allocation14 + $0x68] sm:$0xff]  }
 0xfbf   :  { %v2704_v44 = vpop.eup %2703  ;;  %v2608_v27 = vld [vmem:[#allocation14 + $0x20] sm:$0xff]   ;;  %2375 = vmatprep.subr.bf16.mxu1 %v2607_v40 }
 0xfc0   :  { %v1687_v46 = vmul.f32 %v1684_v43, %v1675_v42  ;;  %v1685_v48 = vadd.f32 1.0, %v2704_v44  ;;  %v2610_v42 = vld [vmem:[#allocation14 + $0x28] sm:$0xff]   ;;  %v2611_v43 = vld [vmem:[#allocation14 + $0x70] sm:$0xff]  }
 0xfc1   :  { %v2612_v44 = vld [vmem:[#allocation14 + $0x30] sm:$0xff]  }
 0xfc2   :  { %v1689_v47 = vpack.c.bf16 %v1687_v46, %v1686_v45  ;;  %v1688_v50 = vmul.f32 %v1685_v48, %v1676_v49  ;;  %2376 = vmatpush3.bf16.msra.mxu1 %v2608_v27  ;;  %v2613_v45 = vld [vmem:[#allocation14 + $0x78] sm:$0xff]  }
 0xfc3   :  { %2377 = vmatprep.subr.bf16.mxu1 %v2609_v41  ;;  %v2614_v46 = vld [vmem:[#allocation14 + $0x38] sm:$0xff]  }
 0xfc4   :  { %1831 = vmatmul.mubr.bf16.vlgmr.msra.gmra.mrb[16].mxu0 %v1689_v47  ;;  %v1690_v51 = vpack.c.bf16 %v1688_v50, %v1688_v50 }
 0xfc5   :  { %1840 = vmatprep.mubr.bf16.mxu0 %v2949_v1 }
 0xfc6   :  { %2378 = vmatpush3.bf16.msra.mxu1 %v2610_v42 }
 0xfc7   :  { %2379 = vmatprep.subr.bf16.mxu1 %v2611_v43 }
 0xfca   :  { %2380 = vmatpush3.bf16.msra.mxu1 %v2612_v44 }
 0xfcb   :  { %2381 = vmatprep.subr.bf16.mxu1 %v2613_v45 }
 0xfcc   :  { %1841 = vmatmul.mubr.bf16.gmra.mrb[20].mxu0 %v1690_v51 }
 0xfce   :  { %2382 = vmatpush3.bf16.msra.mxu1 %v2614_v46 }
0x1097   :  { %v1832_v55 = vpop.f32.mrb[16].mxu0 }
0x1098   :  { %v1833_v56 = vadd.f32 %v1832_v55, %v1711_v53  ;;  %v1834_v57 = vpop.f32.mrb[17].mxu0  ;;  %v1849_v55 = vld [vmem:[#allocation5 + $0x1c] sm:$0x3] }
0x1099   :  { %v1835_v58 = vadd.f32 %v1834_v57, %v1715_v54  ;;  %v1836_v59 = vpop.f32.mrb[18].mxu0  ;;  %v1850_v57 = vld [vmem:[#allocation5 + $0x1e] sm:$0x3] }
0x109a   :  { %v1837_v60 = vadd.f32 %v1836_v59, %v1711_v53  ;;  %v1838_v61 = vpop.f32.mrb[19].mxu0  ;;  %v1908_v59 = vrot.slane %v1849_v55, %v3133_v33 }
0x109b   :  { %v1839_v62 = vadd.f32 %v1838_v61, %v1715_v54  ;;  %v1852_v63 = vadd.f32 %v1835_v58, %v1833_v56 }
0x109d   :  { %1853 = vadd.xlane.f32.xlu0 %v1852_v63  ;;  %v1855_v0 = vadd.f32 %v1839_v62, %v1837_v60  ;;  %v1921_v63 = vrot.slane %v1850_v57, %v3131_v31 }
0x109f   :  { %v1842_v1 = vpop.f32.mrb[20].mxu0  ;;  %1856 = vadd.xlane.f32.xlu1 %v1855_v0  ;;  %v1925_v0 = vrot.slane %v1850_v57, %v3133_v33 }
0x10a0   :  { %v1843_v2 = vadd.f32 %v1842_v1, %v1711_v53  ;;  %v1844_v3 = vpop.f32.mrb[21].mxu0 }
0x10a1   :  { %v1845_v4 = vadd.f32 %v1844_v3, %v1715_v54  ;;  %v1846_v5 = vpop.f32.mrb[22].mxu0 }
0x10a2   :  { %v1847_v6 = vpop.f32.mrb[23].mxu0 }
0x10a3   :  { %v1858_v7 = vadd.f32 %v1845_v4, %v1843_v2 }
0x10a5   :  { %1859 = vadd.xlane.f32.xlu0 %v1858_v7 }
0x112a   :  { %v1854_v8 = vpop.xlane.xlu0 %1853 }
0x112b   :  { %v1861_v9 = vmul.f32 0.00390625, %v1854_v8 }
0x112c   :  { %v1857_v10 = vpop.xlane.xlu1 %1856 }
0x112d   :  { %v3286_v11 = vsub.f32 %v1833_v56, %v1861_v9  ;;  %v3288_v12 = vsub.f32 %v1835_v58, %v1861_v9  ;;  %v1862_v13 = vmul.f32 0.00390625, %v1857_v10  ;;  %v1904_v58 = vrot.slane %v1849_v55, %v3131_v31 }
0x112f   :  { %v3290_v16 = vsub.f32 %v1837_v60, %v1862_v13  ;;  %v3292_v19 = vsub.f32 %v1839_v62, %v1862_v13  ;;  %v1870_v14 = vmul.f32 %v3286_v11, %v3286_v11  ;;  %v1871_v20 = vmul.f32 %v3288_v12, %v3288_v12 }
0x1131   :  { %v1876_v15 = vadd.f32 %v1871_v20, %v1870_v14  ;;  %v1872_v21 = vmul.f32 %v3290_v16, %v3290_v16  ;;  %v1873_v22 = vmul.f32 %v3292_v19, %v3292_v19 }
0x1132   :  { %v1860_v23 = vpop.xlane.xlu0 %1859 }
0x1133   :  { %v1863_v17 = vmul.f32 0.00390625, %v1860_v23  ;;  %1877 = vadd.xlane.f32.xlu1 %v1876_v15  ;;  %v1879_v18 = vadd.f32 %v1873_v22, %v1872_v21 }
0x1135   :  { %v3302_v24 = vsub.f32 %v1843_v2, %v1863_v17  ;;  %v3304_v25 = vsub.f32 %v1845_v4, %v1863_v17  ;;  %1880 = vadd.xlane.f32.xlu0 %v1879_v18 }
0x1137   :  { %v1874_v26 = vmul.f32 %v3302_v24, %v3302_v24  ;;  %v1875_v29 = vmul.f32 %v3304_v25, %v3304_v25 }
0x1139   :  { %v1882_v30 = vadd.f32 %v1875_v29, %v1874_v26 }
0x113b   :  { %1883 = vadd.xlane.f32.xlu1 %v1882_v30 }
0x11c0   :  { %v1878_v47 = vpop.xlane.xlu1 %1877 }
0x11c1   :  { %v1885_v48 = vmul.f32 0.00390625, %v1878_v47 }
0x11c2   :  { %v1881_v49 = vpop.xlane.xlu0 %1880 }
0x11c3   :  { %v1888_v50 = vadd.f32 1e-05, %v1885_v48  ;;  %v1886_v51 = vmul.f32 0.00390625, %v1881_v49 }
0x11c5   :  { %2705 = vrsqrt.f32 %v1888_v50  ;;  %v1889_v52 = vadd.f32 1e-05, %v1886_v51 }
0x11c7   :  { %2707 = vrsqrt.f32 %v1889_v52 }
0x11c8   :  { %v1884_v53 = vpop.xlane.xlu1 %1883 }
0x11c9   :  { %v1887_v54 = vmul.f32 0.00390625, %v1884_v53 }
0x11cb   :  { %v1890_v56 = vadd.f32 1e-05, %v1887_v54  ;;  %v2287_v54 = vld [vmem:[#allocation5 + $0x20] ss:$0 sm:$0xff] }
0x11cd   :  { %2709 = vrsqrt.f32 %v1890_v56 }
0x11cf   :  { %v2706_v60 = vpop.eup %2705 }
0x11d0   :  { %v1894_v61 = vmul.f32 %v2706_v60, %v3286_v11  ;;  %v1895_v62 = vmul.f32 %v2706_v60, %v3288_v12 }
0x11d1   :  { %v2708_v1 = vpop.eup %2707 }
0x11d2   :  { %v1911_v2 = vmul.f32 %v1904_v58, %v1894_v61  ;;  %v1896_v3 = vmul.f32 %v2708_v1, %v3290_v16  ;;  %v1897_v4 = vmul.f32 %v2708_v1, %v3292_v19  ;;  %v1912_v5 = vmul.f32 %v1908_v59, %v1895_v62 }
0x11d4   :  { %v1913_v6 = vmul.f32 %v1904_v58, %v1896_v3  ;;  %v1914_v7 = vmul.f32 %v1908_v59, %v1897_v4  ;;  %v1929_v8 = vadd.f32 %v1925_v0, %v1912_v5  ;;  %v1928_v9 = vadd.f32 %v1921_v63, %v1911_v2 }
0x11d6   :  { %v1931_v10 = vadd.f32 %v1925_v0, %v1914_v7  ;;  %v1941_v13 = vmul.f32 0.70710677, %v1929_v8  ;;  %v1930_v11 = vadd.f32 %v1921_v63, %v1913_v6  ;;  %v1940_v12 = vmul.f32 0.70710677, %v1928_v9 }
0x11d7   :  { %v2710_v14 = vpop.eup %2709  ;;  %v1935_v30 = vmul.f32 0.5, %v1929_v8  ;;  %v1934_v35 = vmul.f32 0.5, %v1928_v9 }
0x11d8   :  { %v1898_v31 = vmul.f32 %v2710_v14, %v3302_v24  ;;  %v1899_v33 = vmul.f32 %v2710_v14, %v3304_v25  ;;  %v1943_v20 = vmul.f32 0.70710677, %v1931_v10  ;;  %2711 = verf.f32 %v1941_v13 }
0x11d9   :  { %v1942_v15 = vmul.f32 0.70710677, %v1930_v11  ;;  %v1937_v25 = vmul.f32 0.5, %v1931_v10  ;;  %v1936_v39 = vmul.f32 0.5, %v1930_v11 }
0x11da   :  { %2713 = verf.f32 %v1943_v20  ;;  %v1916_v16 = vmul.f32 %v1908_v59, %v1899_v33  ;;  %v1915_v19 = vmul.f32 %v1904_v58, %v1898_v31 }
0x11db   :  { %2715 = verf.f32 %v1940_v12 }
0x11dc   :  { %2717 = verf.f32 %v1942_v15  ;;  %v1933_v21 = vadd.f32 %v1925_v0, %v1916_v16  ;;  %v1932_v22 = vadd.f32 %v1921_v63, %v1915_v19 }
0x11de   :  { %v1945_v23 = vmul.f32 0.70710677, %v1933_v21  ;;  %v1944_v17 = vmul.f32 0.70710677, %v1932_v22  ;;  %v1939_v45 = vmul.f32 0.5, %v1933_v21  ;;  %v1938_v49 = vmul.f32 0.5, %v1932_v22 }
0x11e0   :  { %2719 = verf.f32 %v1945_v23 }
0x11e1   :  { %2721 = verf.f32 %v1944_v17 }
0x11e2   :  { %v2712_v18 = vpop.eup %2711 }
0x11e3   :  { %v1953_v29 = vadd.f32 1.0, %v2712_v18 }
0x11e4   :  { %v2714_v26 = vpop.eup %2713 }
0x11e5   :  { %v2716_v24 = vpop.eup %2715  ;;  %v1955_v32 = vadd.f32 1.0, %v2714_v26  ;;  %v1959_v37 = vmul.f32 %v1953_v29, %v1935_v30 }
0x11e6   :  { %v2718_v34 = vpop.eup %2717  ;;  %v1952_v36 = vadd.f32 1.0, %v2716_v24 }
0x11e7   :  { %v1961_v38 = vmul.f32 %v1955_v32, %v1937_v25  ;;  %v1954_v28 = vadd.f32 1.0, %v2718_v34 }
0x11e8   :  { %v1958_v27 = vmul.f32 %v1952_v36, %v1934_v35 }
0x11e9   :  { %v1965_v40 = vpack.c.bf16 %v1961_v38, %v1959_v37  ;;  %v1960_v41 = vmul.f32 %v1954_v28, %v1936_v39 }
0x11ea   :  { %v2720_v42 = vpop.eup %2719 }
0x11eb   :  { %v2722_v43 = vpop.eup %2721  ;;  %2134 = vmatprep.mubr.bf16.mxu1 %v1965_v40  ;;  %v1964_v44 = vpack.c.bf16 %v1960_v41, %v1958_v27  ;;  %v1957_v46 = vadd.f32 1.0, %v2720_v42 }
0x11ec   :  { %v1956_v47 = vadd.f32 1.0, %v2722_v43 }
0x11ed   :  { %2135 = vmatmul.mubr.bf16.vlgmr.msra.gmra.mrb[24].mxu1 %v1964_v44  ;;  %v1963_v48 = vmul.f32 %v1957_v46, %v1939_v45 }
0x11ee   :  { %v1962_v51 = vmul.f32 %v1956_v47, %v1938_v49 }
0x11ef   :  { %v1967_v50 = vpack.c.bf16 %v1963_v48, %v1963_v48 }
0x11f0   :  { %v1966_v52 = vpack.c.bf16 %v1962_v51, %v1962_v51 }
0x11f1   :  { %2142 = vmatprep.mubr.bf16.mxu1 %v1967_v50 }
0x11f5   :  { %2143 = vmatmul.mubr.bf16.gmra.mrb[28].mxu1 %v1966_v52 }
0x12c0   :  { %v2383_v53 = vpop.f32.mrb[24].mxu1 }
0x12c1   :  { %v2384_v55 = vpop.f32.mrb[25].mxu1 }
0x12c2   :  { %v2385_v56 = vadd.f32 %v2384_v55, %v2383_v53  ;;  %v2386_v57 = vpop.f32.mrb[26].mxu1 }
0x12c3   :  { %v2387_v58 = vpop.f32.mrb[27].mxu1 }
0x12c4   :  { %v2137_v59 = vadd.f32 %v2385_v56, %v2287_v54  ;;  %v2388_v60 = vadd.f32 %v2387_v58, %v2386_v57 }
0x12c6   :  { %2150 = vst [vmem:[#allocation16] sm:$0xff] %v2137_v59  ;;  %v2140_v61 = vadd.f32 %v2388_v60, %v2287_v54 }
0x12c8   :  { %2151 = vst [vmem:[#allocation16 + $0x8] sm:$0xff] %v2140_v61  ;;  %v2389_v62 = vpop.f32.mrb[28].mxu1 }
0x12c9   :  { %v2390_v63 = vpop.f32.mrb[29].mxu1 }
0x12ca   :  { %v2391_v0 = vadd.f32 %v2390_v63, %v2389_v62  ;;  %v2392_v1 = vpop.f32.mrb[30].mxu1 }
0x12cb   :  { %v2393_v2 = vpop.f32.mrb[31].mxu1 }
0x12cc   :  { %v2145_v3 = vadd.f32 %v2391_v0, %v2287_v54 }
0x12ce   :  { %2152 = vst [vmem:[#allocation16 + $0x10] sm:$0xff] %v2145_v3 }
0x12cf   :  { %2910 = shalt.err (!%p2907_p12)
}
0x12d0   :  { %s2911_s0 = scalar_lea.hbm %s3346_s11, 384 }
0x12d1   :  { %p2912_p13 = scmp.ne.s32.totalorder %s3346_s11, %s2911_s0  ;;  %p2915_p0 = scmp.lt.u32.totalorder %s2911_s0, %s3346_s11 }
0x12d3   :  { %p2917_p1 = pnand %p2915_p0, %p2912_p13 }
0x12d5   :  { %2920 = shalt.err (!%p2917_p1)
}
0x12d6   :  { %2164 = dma.vmem_to_hbm [thread:$0]  %s2159_s20, 384, %s3346_s11, [#allocation4], %s2944_s7, %s2944_s7, %s2945_s23  }
0x12d7   :  { %2931 = dma.done.wait [#allocation4], 384  }
0x12d8   :  { %2932 = vsyncadd [#allocation4], 4294966912 }
0x12d9   :  { %2168 = vsyncpa [#allocation3], 1 }
0x12da   :  { %2169 = vsyncpa [#allocation6], 1 }
0x12db   :  { %2170 = vsyncpa [#allocation9], 1 }
0x12dc   :  { %2171 = vsyncpa [#allocation12], 1 }
0x12dd   :  { %2172 = vsyncpa [#allocation15], 1 }
0x12de   :  { %2173 = vsyncpa [#allocation4], 1 }

</bundles_post_ra>
